<compile_context>
chip_gen: v7x
topology: tpu7x:2x2x1
jax: 0.10.0
libtpu: 0.0.40
codegen_flags: <defaults>
</compile_context>

<pallas_src>
import functools

import jax
import jax.numpy as jnp
from jax.experimental import pallas as pl
from jax.experimental.pallas import tpu as pltpu

LANE = 128
FEAT = 512          # backbone feature width == fc input dim
MAX_TILE = 4096     # pixel-tile cap: (512, 4096) f32 intermediate ~8 MiB, safe
                    # inside a 48 MiB scoped-VMEM budget on v5e/v6e/v7x.


def _round_up(x, m):
    return (x + m - 1) // m * m


def _pick_tile(hw, cap=MAX_TILE):
    """Largest multiple-of-128 divisor of hw that is <= cap (lane-dense tiles).

    Falls back to the whole image (block dim == full array dim, always legal)
    when hw has no multiple-of-128 divisor <= cap.
    """
    best = None
    for mult in range(1, cap // LANE + 1):
        t = mult * LANE
        if hw % t == 0:
            best = t
    return best if best is not None else hw


# -----------------------------------------------------------------------------
# Fused kernel (one (b, t) grid step):
#   x:(1, C, tile) f32     cw:(512, C) bf16    cb:(512, 1) f32
#   fw:(n_pad, 512) bf16   fb:(n_pad, 1) f32   o:(1, n_pad, 1) f32
#   acc:(512, 1) f32 VMEM scratch  (per-image GAP accumulator column)
# -----------------------------------------------------------------------------
def _fused_kernel(x_ref, cw_ref, cb_ref, fw_ref, fb_ref, o_ref, acc_ref, *,
                  inv_hw):
    t = pl.program_id(1)
    n_t = pl.num_programs(1)

    @pl.when(t == 0)
    def _init():
        acc_ref[...] = jnp.zeros_like(acc_ref)

    # 1x1 conv as an MXU matmul: (512, C) @ (C, tile) -> (512, tile), f32 acc.
    # Pixels stay on lanes the whole way (lane-dense loads & compute).
    xb = x_ref[0].astype(jnp.bfloat16)                         # (C, tile)
    y = jnp.dot(cw_ref[...], xb, preferred_element_type=jnp.float32)
    y = jnp.maximum(y + cb_ref[...], 0.0)                      # bias + ReLU (VPU)

    # Partial GAP: fold this tile's pixels (lane axis) into the per-image
    # accumulator column.  Single small RMW, no batch-masked update.
    acc_ref[...] += jnp.sum(y, axis=1, keepdims=True)          # (512, 1)

    # Last pixel tile of this image: finish GAP, fc matmul, log_softmax.
    @pl.when(t == n_t - 1)
    def _finalize():
        feat = (acc_ref[...] * inv_hw).astype(jnp.bfloat16)    # (512, 1)
        logits = jnp.dot(fw_ref[...], feat,                    # (n_pad, 1)
                         preferred_element_type=jnp.float32) + fb_ref[...]
        m = jnp.max(logits, axis=0, keepdims=True)
        shifted = logits - m
        lse = jnp.log(jnp.sum(jnp.exp(shifted), axis=0, keepdims=True))
        o_ref[0] = shifted - lse                               # (n_pad, 1)


# -----------------------------------------------------------------------------
# Full forward: stand-in backbone + fc + log_softmax in one pallas_call.
# -----------------------------------------------------------------------------
def classification_resnet_forward(x_nchw, params):
    B, C, H, W = x_nchw.shape
    HW = H * W
    num_classes = params["fc_w"].shape[1]
    n_pad = _round_up(max(num_classes, LANE), LANE)

    tile = _pick_tile(HW)
    tiles_per_image = HW // tile

    # Free reshape -- reads NCHW directly, pixels-on-lanes / channels-on-sublanes.
    x3 = x_nchw.reshape(B, C, HW)

    # Tiny resident constants (weights / biases).
    cw = jnp.transpose(params["conv_w"]).astype(jnp.bfloat16)        # (512, C)
    cb = params["conv_b"].reshape(FEAT, 1).astype(jnp.float32)       # (512, 1)
    # Classifier head: classes padded to a full lane group; padded-class bias
    # = -1e30 so those logits vanish from the softmax normalization.
    fw = jnp.pad(jnp.transpose(params["fc_w"]),
                 ((0, n_pad - num_classes), (0, 0))).astype(jnp.bfloat16)
    fb = jnp.pad(params["fc_b"], (0, n_pad - num_classes),
                 constant_values=-1e30).reshape(n_pad, 1).astype(jnp.float32)

    kernel = functools.partial(_fused_kernel, inv_hw=1.0 / HW)

    out = pl.pallas_call(
        kernel,
        out_shape=jax.ShapeDtypeStruct((B, n_pad, 1), jnp.float32),
        grid_spec=pltpu.PrefetchScalarGridSpec(
            num_scalar_prefetch=0,
            grid=(B, tiles_per_image),
            in_specs=[
                pl.BlockSpec((1, C, tile), lambda b, t: (b, 0, t)),   # x tile
                pl.BlockSpec((FEAT, C), lambda b, t: (0, 0)),         # conv W
                pl.BlockSpec((FEAT, 1), lambda b, t: (0, 0)),         # conv b
                pl.BlockSpec((n_pad, FEAT), lambda b, t: (0, 0)),     # fc W (bf16)
                pl.BlockSpec((n_pad, 1), lambda b, t: (0, 0)),        # fc b
            ],
            out_specs=pl.BlockSpec((1, n_pad, 1), lambda b, t: (b, 0, 0)),
            scratch_shapes=[pltpu.VMEM((FEAT, 1), jnp.float32)],      # GAP acc
        ),
        compiler_params=pltpu.CompilerParams(
            # batch parallel (2 TCs on v7x), pixel axis = sequential reduction
            dimension_semantics=("parallel", "arbitrary"),
            vmem_limit_bytes=48 * 1024 * 1024,   # headroom on v7x's 64 MiB
        ),
    )(x3, cw, cb, fw, fb)

    return out.reshape(B, n_pad)[:, :num_classes]


def init_params(key, in_channels, num_classes):
    k1, k2, k3, k4 = jax.random.split(key, 4)
    return {
        # stand-in backbone: 1x1 conv (Cin -> 512)
        "conv_w": jax.random.normal(k1, (in_channels, FEAT), jnp.float32) * 0.05,
        "conv_b": jax.random.normal(k2, (FEAT,), jnp.float32) * 0.05,
        # module's fc: Linear(512, num_classes); stored as (512, N) = W.T
        "fc_w": jax.random.normal(k3, (FEAT, num_classes), jnp.float32) * 0.05,
        "fc_b": jax.random.normal(k4, (num_classes,), jnp.float32) * 0.05,
    }


def reference_forward(x_nchw, params):
    # Pure-JAX reference with the same precision pattern (bf16 conv, f32 acc).
    B, C, H, W = x_nchw.shape
    xp = jnp.transpose(x_nchw, (0, 2, 3, 1)).reshape(B, H * W, C)
    y = jnp.dot(xp.astype(jnp.bfloat16), params["conv_w"].astype(jnp.bfloat16),
                preferred_element_type=jnp.float32) + params["conv_b"]
    y = jnp.maximum(y, 0.0)
    feat = y.mean(axis=1)                                   # (B, 512)
    logits = feat @ params["fc_w"] + params["fc_b"]
    return jax.nn.log_softmax(logits, axis=-1)


if __name__ == "__main__":
    key = jax.random.PRNGKey(0)
    kx, kp = jax.random.split(key)

    B, C, H, W = 2, 4, 16, 16
    num_classes = 10
    x = jax.random.normal(kx, (B, C, H, W), jnp.float32)
    params = init_params(kp, C, num_classes)

    fwd = jax.jit(classification_resnet_forward)
    out = jax.block_until_ready(fwd(x, params))

    assert out.shape == (B, num_classes)
    # log_softmax rows must (log-)sum to ~0
    row_lse = jax.scipy.special.logsumexp(out, axis=-1)
    assert jnp.all(jnp.abs(row_lse) < 1e-3), row_lse
    # match the pure-JAX reference
    ref = reference_forward(x, params)
    assert jnp.allclose(out, ref, atol=2e-3), float(jnp.max(jnp.abs(out - ref)))

    print("KERNEL_OK")
</pallas_src>

<mosaic_0001>
module attributes {stable_mosaic.version = 11 : i64} {
  func.func @_fused_kernel(%arg0: i32, %arg1: i32, %arg2: memref<1x4x256xf32, #tpu.memory_space<vmem>>, %arg3: memref<512x4xbf16, #tpu.memory_space<vmem>>, %arg4: memref<512x1xf32, #tpu.memory_space<vmem>>, %arg5: memref<128x512xbf16, #tpu.memory_space<vmem>>, %arg6: memref<128x1xf32, #tpu.memory_space<vmem>>, %arg7: memref<1x128x1xf32, #tpu.memory_space<vmem>>, %arg8: memref<512x1xf32, #tpu.memory_space<vmem>>) attributes {dimension_semantics = [#tpu.dimension_semantics<parallel>, #tpu.dimension_semantics<arbitrary>], iteration_bounds = array<i64: 2, 1>, scalar_prefetch = 0 : i64, scratch_operands = 1 : i64, tpu.core_type = #tpu.core_type<tc>, window_params = [{transform_indices = @transform_0, window_bounds = array<i64: 1, 4, 256>}, {pipeline_mode = #tpu.pipeline_mode<synchronous>, transform_indices = @transform_1, window_bounds = array<i64: 512, 4>}, {pipeline_mode = #tpu.pipeline_mode<synchronous>, transform_indices = @transform_2, window_bounds = array<i64: 512, 1>}, {pipeline_mode = #tpu.pipeline_mode<synchronous>, transform_indices = @transform_3, window_bounds = array<i64: 128, 512>}, {pipeline_mode = #tpu.pipeline_mode<synchronous>, transform_indices = @transform_4, window_bounds = array<i64: 128, 1>}, {transform_indices = @transform_5, window_bounds = array<i64: 1, 128, 1>}]} {
    %c0_i32 = arith.constant 0 : i32
    %0 = arith.cmpi eq, %arg1, %c0_i32 : i32
    %1 = arith.extui %0 : i1 to i32
    %c0_i32_0 = arith.constant 0 : i32
    %2 = arith.cmpi ne, %1, %c0_i32_0 : i32
    scf.if %2 {
      %cst_15 = arith.constant 0.000000e+00 : f32
      %21 = vector.broadcast %cst_15 : f32 to vector<512x1xf32>
      %c0_16 = arith.constant 0 : index
      %c0_17 = arith.constant 0 : index
      %22 = vector.load %arg8[%c0_16, %c0_17] : memref<512x1xf32, #tpu.memory_space<vmem>>, vector<512x1xf32>
      tpu.vector_store %arg8[%c0_16, %c0_17], %21 {strides = array<i32>} : memref<512x1xf32, #tpu.memory_space<vmem>>, vector<512x1xf32>,
    } else {
    }
    %c0 = arith.constant 0 : index
    %c0_1 = arith.constant 0 : index
    %c0_2 = arith.constant 0 : index
    %3 = vector.load %arg2[%c0, %c0_1, %c0_2] : memref<1x4x256xf32, #tpu.memory_space<vmem>>, vector<1x4x256xf32>
    %4 = vector.shape_cast %3 : vector<1x4x256xf32> to vector<4x256xf32>
    %5 = arith.truncf %4 : vector<4x256xf32> to vector<4x256xbf16>
    %c0_3 = arith.constant 0 : index
    %c0_4 = arith.constant 0 : index
    %6 = vector.load %arg3[%c0_3, %c0_4] : memref<512x4xbf16, #tpu.memory_space<vmem>>, vector<512x4xbf16>
    %cst = arith.constant dense<0.000000e+00> : vector<512x256xf32>
    %7 = tpu.matmul %6, %5, %cst {dimension_numbers = #tpu.dot_dimension_numbers<[1], [0], [0], [1], [0, 0, 1, 1], [], []>} : vector<512x4xbf16>, vector<4x256xbf16>, vector<512x256xf32> -> vector<512x256xf32>
    %c0_5 = arith.constant 0 : index
    %c0_6 = arith.constant 0 : index
    %8 = vector.load %arg4[%c0_5, %c0_6] : memref<512x1xf32, #tpu.memory_space<vmem>>, vector<512x1xf32>
    %9 = vector.broadcast %8 : vector<512x1xf32> to vector<512x256xf32>
    %10 = arith.addf %7, %9 : vector<512x256xf32>
    %cst_7 = arith.constant 0.000000e+00 : f32
    %11 = vector.broadcast %cst_7 : f32 to vector<512x256xf32>
    %12 = arith.maximumf %10, %11 : vector<512x256xf32>
    %c0_8 = arith.constant 0 : index
    %c0_9 = arith.constant 0 : index
    %13 = vector.load %arg8[%c0_8, %c0_9] : memref<512x1xf32, #tpu.memory_space<vmem>>, vector<512x1xf32>
    %cst_10 = arith.constant dense<0.000000e+00> : vector<512xf32>
    %14 = vector.multi_reduction <add>, %12, %cst_10 [1] : vector<512x256xf32> to vector<512xf32>
    %15 = vector.shape_cast %14 : vector<512xf32> to vector<512x1xf32>
    %16 = arith.addf %13, %15 : vector<512x1xf32>
    %c0_11 = arith.constant 0 : index
    %c0_12 = arith.constant 0 : index
    %17 = vector.load %arg8[%c0_11, %c0_12] : memref<512x1xf32, #tpu.memory_space<vmem>>, vector<512x1xf32>
    tpu.vector_store %arg8[%c0_11, %c0_12], %16 {strides = array<i32>} : memref<512x1xf32, #tpu.memory_space<vmem>>, vector<512x1xf32>,
    %c0_i32_13 = arith.constant 0 : i32
    %18 = arith.cmpi eq, %arg1, %c0_i32_13 : i32
    %19 = arith.extui %18 : i1 to i32
    %c0_i32_14 = arith.constant 0 : i32
    %20 = arith.cmpi ne, %19, %c0_i32_14 : i32
    scf.if %20 {
      %c0_15 = arith.constant 0 : index
      %c0_16 = arith.constant 0 : index
      %21 = vector.load %arg8[%c0_15, %c0_16] : memref<512x1xf32, #tpu.memory_space<vmem>>, vector<512x1xf32>
      %cst_17 = arith.constant 3.906250e-03 : f32
      %22 = vector.broadcast %cst_17 : f32 to vector<512x1xf32>
      %23 = arith.mulf %21, %22 : vector<512x1xf32>
      %24 = arith.truncf %23 : vector<512x1xf32> to vector<512x1xbf16>
      %c0_18 = arith.constant 0 : index
      %c0_19 = arith.constant 0 : index
      %25 = vector.load %arg5[%c0_18, %c0_19] : memref<128x512xbf16, #tpu.memory_space<vmem>>, vector<128x512xbf16>
      %cst_20 = arith.constant dense<0.000000e+00> : vector<128x1xf32>
      %26 = tpu.matmul %25, %24, %cst_20 {dimension_numbers = #tpu.dot_dimension_numbers<[1], [0], [0], [1], [0, 0, 1, 1], [], []>} : vector<128x512xbf16>, vector<512x1xbf16>, vector<128x1xf32> -> vector<128x1xf32>
      %c0_21 = arith.constant 0 : index
      %c0_22 = arith.constant 0 : index
      %27 = vector.load %arg6[%c0_21, %c0_22] : memref<128x1xf32, #tpu.memory_space<vmem>>, vector<128x1xf32>
      %28 = arith.addf %26, %27 : vector<128x1xf32>
      %cst_23 = arith.constant dense<0xFF800000> : vector<1xf32>
      %29 = vector.multi_reduction <maximumf>, %28, %cst_23 [0] : vector<128x1xf32> to vector<1xf32>
      %30 = vector.shape_cast %29 : vector<1xf32> to vector<1x1xf32>
      %31 = vector.broadcast %30 : vector<1x1xf32> to vector<128x1xf32>
      %32 = arith.subf %28, %31 : vector<128x1xf32>
      %33 = math.exp %32 : vector<128x1xf32>
      %cst_24 = arith.constant dense<0.000000e+00> : vector<1xf32>
      %34 = vector.multi_reduction <add>, %33, %cst_24 [0] : vector<128x1xf32> to vector<1xf32>
      %35 = vector.shape_cast %34 : vector<1xf32> to vector<1x1xf32>
      %36 = math.log %35 : vector<1x1xf32>
      %37 = vector.broadcast %36 : vector<1x1xf32> to vector<128x1xf32>
      %38 = arith.subf %32, %37 : vector<128x1xf32>
      %c0_25 = arith.constant 0 : index
      %c0_26 = arith.constant 0 : index
      %c0_27 = arith.constant 0 : index
      %39 = vector.load %arg7[%c0_25, %c0_26, %c0_27] : memref<1x128x1xf32, #tpu.memory_space<vmem>>, vector<1x128x1xf32>
      %40 = vector.shape_cast %39 : vector<1x128x1xf32> to vector<128x1xf32>
      %41 = vector.shape_cast %38 : vector<128x1xf32> to vector<1x128x1xf32>
      tpu.vector_store %arg7[%c0_25, %c0_26, %c0_27], %41 {strides = array<i32>} : memref<1x128x1xf32, #tpu.memory_space<vmem>>, vector<1x128x1xf32>,
    } else {
    }
    return
  }
  func.func @transform_0(%arg0: i32, %arg1: i32) -> (i32, i32, i32) {
    %c0_i32 = arith.constant 0 : i32
    %c0_i32_0 = arith.constant 0 : i32
    return %arg0, %c0_i32, %arg1 : i32, i32, i32
  }
  func.func @transform_1(%arg0: i32, %arg1: i32) -> (i32, i32) {
    %c0_i32 = arith.constant 0 : i32
    %c0_i32_0 = arith.constant 0 : i32
    %c0_i32_1 = arith.constant 0 : i32
    return %c0_i32, %c0_i32_0 : i32, i32
  }
  func.func @transform_2(%arg0: i32, %arg1: i32) -> (i32, i32) {
    %c0_i32 = arith.constant 0 : i32
    %c0_i32_0 = arith.constant 0 : i32
    %c0_i32_1 = arith.constant 0 : i32
    return %c0_i32, %c0_i32_0 : i32, i32
  }
  func.func @transform_3(%arg0: i32, %arg1: i32) -> (i32, i32) {
    %c0_i32 = arith.constant 0 : i32
    %c0_i32_0 = arith.constant 0 : i32
    %c0_i32_1 = arith.constant 0 : i32
    return %c0_i32, %c0_i32_0 : i32, i32
  }
  func.func @transform_4(%arg0: i32, %arg1: i32) -> (i32, i32) {
    %c0_i32 = arith.constant 0 : i32
    %c0_i32_0 = arith.constant 0 : i32
    %c0_i32_1 = arith.constant 0 : i32
    return %c0_i32, %c0_i32_0 : i32, i32
  }
  func.func @transform_5(%arg0: i32, %arg1: i32) -> (i32, i32, i32) {
    %c0_i32 = arith.constant 0 : i32
    %c0_i32_0 = arith.constant 0 : i32
    %c0_i32_1 = arith.constant 0 : i32
    return %arg0, %c0_i32, %c0_i32_0 : i32, i32, i32
  }
}

</mosaic_0001>

<bundles_post_ra>
// kernel: classification_resnet_forward.1
= control target key start
LH: loop header
LB: loop body
LE: loop exit
PB: predicated region body
PF: predicated region fallthrough
CT: control target
= control target key end

     0   :  { %s3136_s18 = smov 0   ;;  %s3138_s19 = smov 0   ;;  %s4394_s0 = inlined_call_operand.vmem [shape: f32[2,4,256], index: 0, kind: input, shape index: {}]   ;;  %s4395_s1 = inlined_call_operand.vmem [shape: bf16[512,4], index: 1, kind: input, shape index: {}]   ;;  %s4396_s2 = inlined_call_operand.vmem [shape: f32[512,1], index: 2, kind: input, shape index: {}]   ;;  %s4397_s3 = inlined_call_operand.vmem [shape: bf16[128,512], index: 3, kind: input, shape index: {}]   ;;  %s4398_s4 = inlined_call_operand.vmem [shape: f32[128,1], index: 4, kind: input, shape index: {}]   ;;  %s4399_s5 = inlined_call_operand.vmem [shape: f32[2,128,1], index: 5, kind: output, shape index: {}]  }
   0x1   :  { %s3140_s20 = smov 0  }
   0x2 LB: > { %s27_s21 = sadd.s32 1, %s3098_s19  ;;  %p2701_p0 = scmp.ge.s32.totalorder %s3102_s20, 1  ;;  %s3102_s20 = sphi %s3140_s20, %s15_s20   ;;  %s3098_s19 = sphi %s3138_s19, %s4475_s19   ;;  %s3094_s18 = sphi %s3136_s18, %s4474_s18  }
   0x3   : > { %p29_p1 = scmp.ge.s32.totalorder %s27_s21, 2  ;;  %p206_p2 = scmp.lt.s32.totalorder %s3102_s20, 3 }
   0x5   : > { %s4477_s21 = smov (%p29_p1, %s27_s21), 0  ;;  %p207_p3 = pnand %p2701_p0, %p206_p2 }
   0x7   : > { %210 = sbr.rel (%p207_p3) target bundleno = 1130 (0x46a), region = 40 }
   0xe   : > { %p239_p4 = scmp.lt.s32.totalorder %s3094_s18, 1  ;;  %v3104_v0 = vmov 0   ;;  %vm1034_vm0 = vcmask 1041408   ;;  %v409_v6 = vld [vmem:[%s4396_s2 + $0x80] sm:$0xff]  ;;  %vm937_vm1 = vcmask 31744   ;;  %v410_v9 = vld [vmem:[%s4396_s2 + $0x88] sm:$0xff] }
   0xf   : > { %1073 = vmatprep.mubr.bf16.mxu0 %v3104_v0  ;;  %2963 = vset.pattern.permute.xlu0 %v3104_v0  ;;  %v2966_v7 = vld [vmem:[%s4395_s1] sm:$0xff]   ;;  %v394_v10 = vld [vmem:[%s4396_s2 + $0x8] sm:$0xff]  ;;  %v411_v11 = vld [vmem:[%s4396_s2 + $0x90] sm:$0xff]  ;;  %vm258_vm2 = vcmask 7168  }
  0x10   : > { %s4479_s18 = smov (!%p239_p4, %s3094_s18), 1  ;;  %2964 = vset.pattern.permute.xlu1 %v3104_v0  ;;  %1313 = vmatprep.mubr.bf16.mxu1 %v3104_v0  ;;  %v393_v8 = vld [vmem:[%s4396_s2] sm:$0xff]  ;;  %v412_v12 = vld [vmem:[%s4396_s2 + $0x98] sm:$0xff]  ;;  %v2967_v13 = vld [vmem:[%s4395_s1 + $0x8] sm:$0xff]  }
  0x11   : > { %s2805_s22 = sshll.u32 %s4479_s18, 3  ;;  %539 = vperm.xlu0 %2963, %v409_v6   ;;  %459 = vperm.xlu1 %2964, %v393_v8   ;;  %v395_v14 = vld [vmem:[%s4396_s2 + $0x10] sm:$0xff]  ;;  %v396_v15 = vld [vmem:[%s4396_s2 + $0x18] sm:$0xff]  ;;  %v413_v16 = vld [vmem:[%s4396_s2 + $0xa0] sm:$0xff]  ;;  %s2806_s16 = sshll.u32 %s4479_s18, 7 }
  0x12   : > { %s246_s25 = scalar_lea.vmem %s4394_s0, %s2805_s22  ;;  %v414_v17 = vld [vmem:[%s4396_s2 + $0xa8] sm:$0xff]  ;;  %v2968_v18 = vld [vmem:[%s4395_s1 + $0x10] sm:$0xff]   ;;  %v397_v19 = vld [vmem:[%s4396_s2 + $0x20] sm:$0xff]  ;;  %s4335_s23 = scalar_lea.vmem %s4399_s5, %s2806_s16 }
  0x13   : > { %v323_v1 = vld [vmem:[%s246_s25] sm:$0xff]  ;;  %v398_v20 = vld [vmem:[%s4396_s2 + $0x28] sm:$0xff]  ;;  %v415_v21 = vld [vmem:[%s4396_s2 + $0xb0] sm:$0xff] }
  0x14   : > { %v325_v2 = vcombine.high %v323_v1, %v323_v1  ;;  %v327_v3 = vpack.c.bf16 %v323_v1, %v323_v1  ;;  %v416_v22 = vld [vmem:[%s4396_s2 + $0xb8] sm:$0xff]  ;;  %v399_v24 = vld [vmem:[%s4396_s2 + $0x30] sm:$0xff]  ;;  %v417_v26 = vld [vmem:[%s4396_s2 + $0xc0] sm:$0xff] }
  0x15   : > { %544 = vperm.xlu0 %2963, %v410_v9   ;;  %464 = vperm.xlu1 %2964, %v394_v10   ;;  %v2969_v23 = vld [vmem:[%s4395_s1 + $0x18] sm:$0xff]   ;;  %v418_v27 = vld [vmem:[%s4396_s2 + $0xc8] sm:$0xff]  ;;  %v2970_v28 = vld [vmem:[%s4395_s1 + $0x20] sm:$0xff]  }
  0x16   : > { %v328_v4 = vpack.c.bf16 %v325_v2, %v325_v2  ;;  %v1036_v5 = vsel %vm1034_vm0, %v327_v3, 0  ;;  %v400_v25 = vld [vmem:[%s4396_s2 + $0x38] sm:$0xff]  ;;  %v401_v29 = vld [vmem:[%s4396_s2 + $0x40] sm:$0xff]  ;;  %v402_v30 = vld [vmem:[%s4396_s2 + $0x48] sm:$0xff] }
  0x17   : > { %v419_v31 = vld [vmem:[%s4396_s2 + $0xd0] sm:$0xff]  ;;  %v420_v32 = vld [vmem:[%s4396_s2 + $0xd8] sm:$0xff]  ;;  %v2971_v33 = vld [vmem:[%s4395_s1 + $0x28] sm:$0xff]  }
  0x18   : > { %2738 = vmatprep.subr.msk.bf16.mxu0 %vm1034_vm0, %v328_v4  ;;  %2935 = vmatprep.subr.msk.bf16.mxu1 %vm1034_vm0, %v328_v4  ;;  %v403_v34 = vld [vmem:[%s4396_s2 + $0x50] sm:$0xff]  ;;  %v404_v35 = vld [vmem:[%s4396_s2 + $0x58] sm:$0xff]  ;;  %v2974_v38 = vld [vmem:[%s4395_s1 + $0x40] sm:$0xff]  }
  0x19   : > { %1042 = vmatpush1.bf16.msra.mxu0 %v1036_v5  ;;  %2936 = vmatpush1.bf16.msra.mxu1 %v1036_v5  ;;  %v2972_v36 = vld [vmem:[%s4395_s1 + $0x30] sm:$0xff]   ;;  %v2973_v37 = vld [vmem:[%s4395_s1 + $0x38] sm:$0xff]   ;;  %v2975_v39 = vld [vmem:[%s4395_s1 + $0x48] sm:$0xff]  }
  0x1a   : > { %549 = vperm.xlu0 %2963, %v411_v11   ;;  %554 = vperm.xlu1 %2964, %v412_v12   ;;  %v2976_v40 = vld [vmem:[%s4395_s1 + $0x50] sm:$0xff]   ;;  %v2977_v41 = vld [vmem:[%s4395_s1 + $0x58] sm:$0xff]   ;;  %v2978_v42 = vld [vmem:[%s4395_s1 + $0x60] sm:$0xff]  }
  0x1b   : > { %v2979_v43 = vld [vmem:[%s4395_s1 + $0x68] sm:$0xff]   ;;  %v2980_v44 = vld [vmem:[%s4395_s1 + $0x70] sm:$0xff]   ;;  %v2981_v45 = vld [vmem:[%s4395_s1 + $0x78] sm:$0xff]  }
  0x1c   : > { %2739 = vmatmul.mubr.msk.bf16.vlgmr.msra.gmra.mrb[0].mxu0 %vm937_vm1, %v2966_v7  ;;  %v2982_v46 = vld [vmem:[%s4395_s1 + $0xc0] sm:$0xff]   ;;  %v2984_v48 = vld [vmem:[%s4395_s1 + $0xc8] sm:$0xff]   ;;  %v2986_v50 = vld [vmem:[%s4395_s1 + $0xd0] sm:$0xff]  }
  0x1d   : > { %1083 = vmatprep.mubr.bf16.mxu0 %v3104_v0  ;;  %2763 = vmatmul.mubr.msk.bf16.vlgmr.msra.gmra.mrb[0].mxu1 %vm937_vm1, %v2982_v46  ;;  %v2983_v47 = vld [vmem:[%s4395_s1 + $0x80] sm:$0xff]   ;;  %v2985_v49 = vld [vmem:[%s4395_s1 + $0x88] sm:$0xff]   ;;  %v2987_v51 = vld [vmem:[%s4395_s1 + $0x90] sm:$0xff]  }
  0x1e   : > { %469 = vperm.xlu0 %2963, %v395_v14   ;;  %474 = vperm.xlu1 %2964, %v396_v15   ;;  %v2988_v52 = vld [vmem:[%s4395_s1 + $0xd8] sm:$0xff]   ;;  %v2990_v54 = vld [vmem:[%s4395_s1 + $0xe0] sm:$0xff]   ;;  %v2992_v58 = vld [vmem:[%s4395_s1 + $0xe8] sm:$0xff]  }
  0x1f   : > { %1323 = vmatprep.mubr.bf16.mxu1 %v3104_v0  ;;  %v2989_v53 = vld [vmem:[%s4395_s1 + $0x98] sm:$0xff]   ;;  %v2991_v55 = vld [vmem:[%s4395_s1 + $0xa0] sm:$0xff]   ;;  %v2993_v60 = vld [vmem:[%s4395_s1 + $0xa8] sm:$0xff]  }
  0x20   : > { %v2994_v62 = vld [vmem:[%s4395_s1 + $0xf0] sm:$0xff]   ;;  %v2996_v4 = vld [vmem:[%s4395_s1 + $0xf8] sm:$0xff]  }
  0x21   : > { %v2995_v2 = vld [vmem:[%s4395_s1 + $0xb0] sm:$0xff]   ;;  %v2997_v6 = vld [vmem:[%s4395_s1 + $0xb8] sm:$0xff]  }
  0x22   : > { %559 = vperm.xlu0 %2963, %v413_v16   ;;  %564 = vperm.xlu1 %2964, %v414_v17  }
  0x24   : > { %2740 = vmatmul.mubr.msk.bf16.gmra.mrb[4].mxu0 %vm937_vm1, %v2967_v13 }
  0x25   : > { %1093 = vmatprep.mubr.bf16.mxu0 %v3104_v0  ;;  %2764 = vmatmul.mubr.msk.bf16.gmra.mrb[4].mxu1 %vm937_vm1, %v2984_v48 }
  0x26   : > { %479 = vperm.xlu0 %2963, %v397_v19   ;;  %484 = vperm.xlu1 %2964, %v398_v20  }
  0x27   : > { %1333 = vmatprep.mubr.bf16.mxu1 %v3104_v0 }
  0x2a   : > { %569 = vperm.xlu0 %2963, %v415_v21   ;;  %574 = vperm.xlu1 %2964, %v416_v22  }
  0x2c   : > { %2741 = vmatmul.mubr.msk.bf16.gmra.mrb[8].mxu0 %vm937_vm1, %v2968_v18 }
  0x2d   : > { %1103 = vmatprep.mubr.bf16.mxu0 %v3104_v0  ;;  %2765 = vmatmul.mubr.msk.bf16.gmra.mrb[8].mxu1 %vm937_vm1, %v2986_v50 }
  0x2e   : > { %489 = vperm.xlu0 %2963, %v399_v24   ;;  %494 = vperm.xlu1 %2964, %v400_v25  }
  0x2f   : > { %1343 = vmatprep.mubr.bf16.mxu1 %v3104_v0 }
  0x32   : > { %579 = vperm.xlu0 %2963, %v417_v26   ;;  %584 = vperm.xlu1 %2964, %v418_v27  }
  0x34   : > { %2742 = vmatmul.mubr.msk.bf16.gmra.mrb[12].mxu0 %vm937_vm1, %v2969_v23 }
  0x35   : > { %1113 = vmatprep.mubr.bf16.mxu0 %v3104_v0  ;;  %2766 = vmatmul.mubr.msk.bf16.gmra.mrb[12].mxu1 %vm937_vm1, %v2988_v52 }
  0x36   : > { %499 = vperm.xlu0 %2963, %v401_v29   ;;  %504 = vperm.xlu1 %2964, %v402_v30  }
  0x37   : > { %1353 = vmatprep.mubr.bf16.mxu1 %v3104_v0 }
  0x3a   : > { %589 = vperm.xlu0 %2963, %v419_v31   ;;  %594 = vperm.xlu1 %2964, %v420_v32  }
  0x3c   : > { %2743 = vmatmul.mubr.msk.bf16.gmra.mrb[16].mxu0 %vm937_vm1, %v2970_v28 }
  0x3d   : > { %1123 = vmatprep.mubr.bf16.mxu0 %v3104_v0  ;;  %2767 = vmatmul.mubr.msk.bf16.gmra.mrb[16].mxu1 %vm937_vm1, %v2990_v54 }
  0x3e   : > { %509 = vperm.xlu0 %2963, %v403_v34   ;;  %514 = vperm.xlu1 %2964, %v404_v35  }
  0x3f   : > { %1363 = vmatprep.mubr.bf16.mxu1 %v3104_v0 }
  0x44   : > { %2744 = vmatmul.mubr.msk.bf16.gmra.mrb[20].mxu0 %vm937_vm1, %v2971_v33 }
  0x45   : > { %1133 = vmatprep.mubr.bf16.mxu0 %v3104_v0  ;;  %2768 = vmatmul.mubr.msk.bf16.gmra.mrb[20].mxu1 %vm937_vm1, %v2992_v58 }
  0x46   : > { %1373 = vmatprep.mubr.bf16.mxu1 %v3104_v0 }
  0x4c   : > { %2745 = vmatmul.mubr.msk.bf16.gmra.mrb[24].mxu0 %vm937_vm1, %v2972_v36 }
  0x4d   : > { %1143 = vmatprep.mubr.bf16.mxu0 %v3104_v0  ;;  %2769 = vmatmul.mubr.msk.bf16.gmra.mrb[24].mxu1 %vm937_vm1, %v2994_v62 }
  0x4e   : > { %1383 = vmatprep.mubr.bf16.mxu1 %v3104_v0 }
  0x54   : > { %2746 = vmatmul.mubr.msk.bf16.gmra.mrb[28].mxu0 %vm937_vm1, %v2973_v37 }
  0x55   : > { %1153 = vmatprep.mubr.bf16.mxu0 %v3104_v0  ;;  %2770 = vmatmul.mubr.msk.bf16.gmra.mrb[28].mxu1 %vm937_vm1, %v2996_v4 }
  0x5c   : > { %2747 = vmatmul.mubr.msk.bf16.gmra.mrb[32].mxu0 %vm937_vm1, %v2974_v38 }
  0x5d   : > { %1163 = vmatprep.mubr.bf16.mxu0 %v3104_v0 }
  0x64   : > { %2748 = vmatmul.mubr.msk.bf16.gmra.mrb[36].mxu0 %vm937_vm1, %v2975_v39 }
  0x65   : > { %1173 = vmatprep.mubr.bf16.mxu0 %v3104_v0 }
  0x6c   : > { %2749 = vmatmul.mubr.msk.bf16.gmra.mrb[40].mxu0 %vm937_vm1, %v2976_v40  ;;  %v3105_v40 = vmov 0.0  }
  0x6d   : > { %1183 = vmatprep.mubr.bf16.mxu0 %v3104_v0  ;;  %259 = vst.msk [vmem:[#allocation2] sm:$0xff] %vm258_vm2, %v3105_v40  ;;  %260 = vst.msk [vmem:[#allocation2 + $0x8] sm:$0xff] %vm258_vm2, %v3105_v40 }
  0x6e   : > { %261 = vst.msk [vmem:[#allocation2 + $0x10] sm:$0xff] %vm258_vm2, %v3105_v40  ;;  %262 = vst.msk [vmem:[#allocation2 + $0x18] sm:$0xff] %vm258_vm2, %v3105_v40 }
  0x6f   : > { %263 = vst.msk [vmem:[#allocation2 + $0x20] sm:$0xff] %vm258_vm2, %v3105_v40  ;;  %264 = vst.msk [vmem:[#allocation2 + $0x28] sm:$0xff] %vm258_vm2, %v3105_v40 }
  0x70   : > { %265 = vst.msk [vmem:[#allocation2 + $0x30] sm:$0xff] %vm258_vm2, %v3105_v40  ;;  %266 = vst.msk [vmem:[#allocation2 + $0x38] sm:$0xff] %vm258_vm2, %v3105_v40 }
  0x71   : > { %267 = vst.msk [vmem:[#allocation2 + $0x40] sm:$0xff] %vm258_vm2, %v3105_v40  ;;  %268 = vst.msk [vmem:[#allocation2 + $0x48] sm:$0xff] %vm258_vm2, %v3105_v40 }
  0x72   : > { %269 = vst.msk [vmem:[#allocation2 + $0x50] sm:$0xff] %vm258_vm2, %v3105_v40  ;;  %270 = vst.msk [vmem:[#allocation2 + $0x58] sm:$0xff] %vm258_vm2, %v3105_v40 }
  0x73   : > { %271 = vst.msk [vmem:[#allocation2 + $0x60] sm:$0xff] %vm258_vm2, %v3105_v40  ;;  %272 = vst.msk [vmem:[#allocation2 + $0x68] sm:$0xff] %vm258_vm2, %v3105_v40 }
  0x74   : > { %2750 = vmatmul.mubr.msk.bf16.gmra.mrb[44].mxu0 %vm937_vm1, %v2977_v41  ;;  %273 = vst.msk [vmem:[#allocation2 + $0x70] sm:$0xff] %vm258_vm2, %v3105_v40  ;;  %274 = vst.msk [vmem:[#allocation2 + $0x78] sm:$0xff] %vm258_vm2, %v3105_v40 }
  0x75   : > { %1193 = vmatprep.mubr.bf16.mxu0 %v3104_v0  ;;  %275 = vst.msk [vmem:[#allocation2 + $0x80] sm:$0xff] %vm258_vm2, %v3105_v40  ;;  %276 = vst.msk [vmem:[#allocation2 + $0x88] sm:$0xff] %vm258_vm2, %v3105_v40 }
  0x76   : > { %277 = vst.msk [vmem:[#allocation2 + $0x90] sm:$0xff] %vm258_vm2, %v3105_v40  ;;  %278 = vst.msk [vmem:[#allocation2 + $0x98] sm:$0xff] %vm258_vm2, %v3105_v40 }
  0x77   : > { %279 = vst.msk [vmem:[#allocation2 + $0xa0] sm:$0xff] %vm258_vm2, %v3105_v40  ;;  %280 = vst.msk [vmem:[#allocation2 + $0xa8] sm:$0xff] %vm258_vm2, %v3105_v40 }
  0x78   : > { %281 = vst.msk [vmem:[#allocation2 + $0xb0] sm:$0xff] %vm258_vm2, %v3105_v40  ;;  %282 = vst.msk [vmem:[#allocation2 + $0xb8] sm:$0xff] %vm258_vm2, %v3105_v40 }
  0x79   : > { %283 = vst.msk [vmem:[#allocation2 + $0xc0] sm:$0xff] %vm258_vm2, %v3105_v40  ;;  %284 = vst.msk [vmem:[#allocation2 + $0xc8] sm:$0xff] %vm258_vm2, %v3105_v40 }
  0x7a   : > { %285 = vst.msk [vmem:[#allocation2 + $0xd0] sm:$0xff] %vm258_vm2, %v3105_v40  ;;  %286 = vst.msk [vmem:[#allocation2 + $0xd8] sm:$0xff] %vm258_vm2, %v3105_v40 }
  0x7b   : > { %287 = vst.msk [vmem:[#allocation2 + $0xe0] sm:$0xff] %vm258_vm2, %v3105_v40  ;;  %288 = vst.msk [vmem:[#allocation2 + $0xe8] sm:$0xff] %vm258_vm2, %v3105_v40 }
  0x7c   : > { %2751 = vmatmul.mubr.msk.bf16.gmra.mrb[48].mxu0 %vm937_vm1, %v2978_v42  ;;  %289 = vst.msk [vmem:[#allocation2 + $0xf0] sm:$0xff] %vm258_vm2, %v3105_v40  ;;  %290 = vst.msk [vmem:[#allocation2 + $0xf8] sm:$0xff] %vm258_vm2, %v3105_v40 }
  0x7d   : > { %1203 = vmatprep.mubr.bf16.mxu0 %v3104_v0  ;;  %291 = vst.msk [vmem:[#allocation2 + $0x100] sm:$0xff] %vm258_vm2, %v3105_v40  ;;  %292 = vst.msk [vmem:[#allocation2 + $0x108] sm:$0xff] %vm258_vm2, %v3105_v40 }
  0x7e   : > { %293 = vst.msk [vmem:[#allocation2 + $0x110] sm:$0xff] %vm258_vm2, %v3105_v40  ;;  %294 = vst.msk [vmem:[#allocation2 + $0x118] sm:$0xff] %vm258_vm2, %v3105_v40 }
  0x7f   : > { %295 = vst.msk [vmem:[#allocation2 + $0x120] sm:$0xff] %vm258_vm2, %v3105_v40  ;;  %296 = vst.msk [vmem:[#allocation2 + $0x128] sm:$0xff] %vm258_vm2, %v3105_v40 }
  0x80   : > { %297 = vst.msk [vmem:[#allocation2 + $0x130] sm:$0xff] %vm258_vm2, %v3105_v40  ;;  %298 = vst.msk [vmem:[#allocation2 + $0x138] sm:$0xff] %vm258_vm2, %v3105_v40 }
  0x81   : > { %299 = vst.msk [vmem:[#allocation2 + $0x140] sm:$0xff] %vm258_vm2, %v3105_v40  ;;  %300 = vst.msk [vmem:[#allocation2 + $0x148] sm:$0xff] %vm258_vm2, %v3105_v40 }
  0x82   : > { %301 = vst.msk [vmem:[#allocation2 + $0x150] sm:$0xff] %vm258_vm2, %v3105_v40  ;;  %302 = vst.msk [vmem:[#allocation2 + $0x158] sm:$0xff] %vm258_vm2, %v3105_v40 }
  0x83   : > { %303 = vst.msk [vmem:[#allocation2 + $0x160] sm:$0xff] %vm258_vm2, %v3105_v40  ;;  %304 = vst.msk [vmem:[#allocation2 + $0x168] sm:$0xff] %vm258_vm2, %v3105_v40 }
  0x84   : > { %2752 = vmatmul.mubr.msk.bf16.gmra.mrb[52].mxu0 %vm937_vm1, %v2979_v43  ;;  %305 = vst.msk [vmem:[#allocation2 + $0x170] sm:$0xff] %vm258_vm2, %v3105_v40  ;;  %306 = vst.msk [vmem:[#allocation2 + $0x178] sm:$0xff] %vm258_vm2, %v3105_v40 }
  0x85   : > { %1213 = vmatprep.mubr.bf16.mxu0 %v3104_v0  ;;  %307 = vst.msk [vmem:[#allocation2 + $0x180] sm:$0xff] %vm258_vm2, %v3105_v40  ;;  %308 = vst.msk [vmem:[#allocation2 + $0x188] sm:$0xff] %vm258_vm2, %v3105_v40 }
  0x86   : > { %309 = vst.msk [vmem:[#allocation2 + $0x190] sm:$0xff] %vm258_vm2, %v3105_v40  ;;  %310 = vst.msk [vmem:[#allocation2 + $0x198] sm:$0xff] %vm258_vm2, %v3105_v40 }
  0x87   : > { %311 = vst.msk [vmem:[#allocation2 + $0x1a0] sm:$0xff] %vm258_vm2, %v3105_v40  ;;  %312 = vst.msk [vmem:[#allocation2 + $0x1a8] sm:$0xff] %vm258_vm2, %v3105_v40 }
  0x88   : > { %313 = vst.msk [vmem:[#allocation2 + $0x1b0] sm:$0xff] %vm258_vm2, %v3105_v40  ;;  %314 = vst.msk [vmem:[#allocation2 + $0x1b8] sm:$0xff] %vm258_vm2, %v3105_v40 }
  0x89   : > { %315 = vst.msk [vmem:[#allocation2 + $0x1c0] sm:$0xff] %vm258_vm2, %v3105_v40  ;;  %316 = vst.msk [vmem:[#allocation2 + $0x1c8] sm:$0xff] %vm258_vm2, %v3105_v40 }
  0x8a   : > { %317 = vst.msk [vmem:[#allocation2 + $0x1d0] sm:$0xff] %vm258_vm2, %v3105_v40  ;;  %318 = vst.msk [vmem:[#allocation2 + $0x1d8] sm:$0xff] %vm258_vm2, %v3105_v40 }
  0x8b   : > { %319 = vst.msk [vmem:[#allocation2 + $0x1e0] sm:$0xff] %vm258_vm2, %v3105_v40  ;;  %320 = vst.msk [vmem:[#allocation2 + $0x1e8] sm:$0xff] %vm258_vm2, %v3105_v40 }
  0x8c   : > { %2753 = vmatmul.mubr.msk.bf16.gmra.mrb[56].mxu0 %vm937_vm1, %v2980_v44  ;;  %321 = vst.msk [vmem:[#allocation2 + $0x1f0] sm:$0xff] %vm258_vm2, %v3105_v40  ;;  %322 = vst.msk [vmem:[#allocation2 + $0x1f8] sm:$0xff] %vm258_vm2, %v3105_v40 }
  0x8d   : > { %1223 = vmatprep.mubr.bf16.mxu0 %v3104_v0 }
  0x90   : > { %v3364_v56 = vpop.permute.xlu0 %539  ;;  %v460_v57 = vpop.permute.xlu1 %459 }
  0x94   : > { %2754 = vmatmul.mubr.msk.bf16.gmra.mrb[60].mxu0 %vm937_vm1, %v2981_v45  ;;  %v3372_v59 = vpop.permute.xlu0 %544  ;;  %v465_v61 = vpop.permute.xlu1 %464 }
  0x95   : > { %1233 = vmatprep.mubr.bf16.mxu0 %v3104_v0 }
  0x99   : > { %v3383_v63 = vpop.permute.xlu0 %549  ;;  %v3386_v1 = vpop.permute.xlu1 %554 }
  0x9c   : > { %2755 = vmatmul.mubr.msk.bf16.gmra.mrb[64].mxu0 %vm937_vm1, %v2983_v47 }
  0x9d   : > { %1243 = vmatprep.mubr.bf16.mxu0 %v3104_v0  ;;  %v470_v3 = vpop.permute.xlu0 %469  ;;  %v475_v5 = vpop.permute.xlu1 %474 }
  0xa1   : > { %v3401_v7 = vpop.permute.xlu0 %559  ;;  %v3404_v8 = vpop.permute.xlu1 %564 }
  0xa4   : > { %2756 = vmatmul.mubr.msk.bf16.gmra.mrb[68].mxu0 %vm937_vm1, %v2985_v49 }
  0xa5   : > { %1253 = vmatprep.mubr.bf16.mxu0 %v3104_v0  ;;  %v3406_v14 = vpop.permute.xlu0 %479  ;;  %v3408_v19 = vpop.permute.xlu1 %484 }
  0xa9   : > { %v3410_v25 = vpop.permute.xlu0 %569  ;;  %v3412_v30 = vpop.permute.xlu1 %574 }
  0xac   : > { %2757 = vmatmul.mubr.msk.bf16.gmra.mrb[72].mxu0 %vm937_vm1, %v2987_v51 }
  0xad   : > { %1263 = vmatprep.mubr.bf16.mxu0 %v3104_v0  ;;  %v3422_v39 = vpop.permute.xlu0 %489  ;;  %v495_v43 = vpop.permute.xlu1 %494 }
  0xb1   : > { %v3563_v58 = vpop.permute.xlu1 %584 }
  0xb4   : > { %2758 = vmatmul.mubr.msk.bf16.gmra.mrb[76].mxu0 %vm937_vm1, %v2989_v53  ;;  %v3561_v53 = vpop.permute.xlu0 %579 }
  0xb5   : > { %1273 = vmatprep.mubr.bf16.mxu0 %v3104_v0 }
  0xbc   : > { %2759 = vmatmul.mubr.msk.bf16.gmra.mrb[80].mxu0 %vm937_vm1, %v2991_v55 }
  0xbd   : > { %1283 = vmatprep.mubr.bf16.mxu0 %v3104_v0 }
  0xc4   : > { %2760 = vmatmul.mubr.msk.bf16.gmra.mrb[84].mxu0 %vm937_vm1, %v2993_v60 }
  0xc5   : > { %1293 = vmatprep.mubr.bf16.mxu0 %v3104_v0 }
  0xcc   : > { %2761 = vmatmul.mubr.msk.bf16.gmra.mrb[88].mxu0 %vm937_vm1, %v2995_v2 }
  0xcd   : > { %1303 = vmatprep.mubr.bf16.mxu0 %v3104_v0 }
  0xd4   : > { %2762 = vmatmul.mubr.msk.bf16.gmra.mrb[92].mxu0 %vm937_vm1, %v2997_v6 }
  0xef   : > { %v1075_v9 = vpop.f32.mrb[0].mxu0 }
  0xf0   : > { %v1076_v10 = vadd.f32 %v1075_v9, %v460_v57  ;;  %v1077_v11 = vpop.f32.mrb[1].mxu0 }
  0xf1   : > { %v1078_v12 = vadd.f32 %v1077_v11, %v460_v57  ;;  %v1079_v13 = vpop.f32.mrb[2].mxu0 }
  0xf2   : > { %v1394_v0 = vmax.f32 %v1076_v10, 0.0  ;;  %v1080_v15 = vadd.f32 %v1079_v13, %v465_v61  ;;  %v1081_v16 = vpop.f32.mrb[3].mxu0  ;;  %v505_v13 = vpop.permute.xlu1 %504 }
  0xf3   : > { %v1395_v17 = vmax.f32 %v1078_v12, 0.0  ;;  %v1082_v18 = vadd.f32 %v1081_v16, %v465_v61 }
  0xf4   : > { %v1396_v20 = vmax.f32 %v1080_v15, 0.0 }
  0xf5   : > { %v1397_v21 = vmax.f32 %v1082_v18, 0.0  ;;  %v1586_v22 = vadd.f32 %v1395_v17, %v1394_v0 }
  0xf7   : > { %v1085_v23 = vpop.f32.mrb[4].mxu0  ;;  %1587 = vadd.xlane.f32.xlu0 %v1586_v22  ;;  %v1589_v24 = vadd.f32 %v1397_v21, %v1396_v20 }
  0xf8   : > { %v1086_v26 = vadd.f32 %v1085_v23, %v470_v3  ;;  %v1087_v27 = vpop.f32.mrb[5].mxu0  ;;  %v3571_v23 = vpop.permute.xlu1 %594 }
  0xf9   : > { %v1088_v28 = vadd.f32 %v1087_v27, %v470_v3  ;;  %v1089_v29 = vpop.f32.mrb[6].mxu0  ;;  %1590 = vadd.xlane.f32.xlu1 %v1589_v24 }
  0xfa   : > { %v1398_v31 = vmax.f32 %v1086_v26, 0.0  ;;  %v3414_v32 = vadd.f32 %v1089_v29, %v475_v5  ;;  %v1091_v33 = vpop.f32.mrb[7].mxu0 }
  0xfb   : > { %v1399_v34 = vmax.f32 %v1088_v28, 0.0  ;;  %v3416_v35 = vadd.f32 %v1091_v33, %v475_v5  ;;  %v500_v5 = vpop.permute.xlu0 %499 }
  0xfc   : > { %v1400_v36 = vmax.f32 %v3414_v32, 0.0 }
  0xfd   : > { %v1401_v37 = vmax.f32 %v3416_v35, 0.0  ;;  %v3420_v38 = vadd.f32 %v1399_v34, %v1398_v31 }
  0xff   : > { %v1095_v41 = vpop.f32.mrb[8].mxu0  ;;  %1593 = vadd.xlane.f32.xlu0 %v3420_v38  ;;  %v1595_v42 = vadd.f32 %v1401_v37, %v1400_v36  ;;  %v3567_v17 = vpop.permute.xlu0 %589 }
 0x100   : > { %v1096_v44 = vadd.f32 %v1095_v41, %v3406_v14  ;;  %v1097_v45 = vpop.f32.mrb[9].mxu0  ;;  %v515_v36 = vpop.permute.xlu1 %514 }
 0x101   : > { %v1098_v46 = vadd.f32 %v1097_v45, %v3406_v14  ;;  %v1099_v47 = vpop.f32.mrb[10].mxu0  ;;  %1596 = vadd.xlane.f32.xlu1 %v1595_v42 }
 0x102   : > { %v1402_v48 = vmax.f32 %v1096_v44, 0.0  ;;  %v1100_v49 = vadd.f32 %v1099_v47, %v3408_v19  ;;  %v1101_v50 = vpop.f32.mrb[11].mxu0 }
 0x103   : > { %v1403_v51 = vmax.f32 %v1098_v46, 0.0  ;;  %v1102_v52 = vadd.f32 %v1101_v50, %v3408_v19  ;;  %v510_v33 = vpop.permute.xlu0 %509 }
 0x104   : > { %v1404_v54 = vmax.f32 %v1100_v49, 0.0 }
 0x105   : > { %v1405_v55 = vmax.f32 %v1102_v52, 0.0  ;;  %v1598_v57 = vadd.f32 %v1403_v51, %v1402_v48 }
 0x107   : > { %v1105_v60 = vpop.f32.mrb[12].mxu0  ;;  %1599 = vadd.xlane.f32.xlu0 %v1598_v57  ;;  %v1601_v61 = vadd.f32 %v1405_v55, %v1404_v54 }
 0x108   : > { %v1106_v62 = vadd.f32 %v1105_v60, %v3422_v39  ;;  %v1107_v2 = vpop.f32.mrb[13].mxu0 }
 0x109   : > { %v1108_v3 = vadd.f32 %v1107_v2, %v3422_v39  ;;  %v1109_v4 = vpop.f32.mrb[14].mxu0  ;;  %1602 = vadd.xlane.f32.xlu1 %v1601_v61 }
 0x10a   : > { %v1406_v6 = vmax.f32 %v1106_v62, 0.0  ;;  %v1110_v9 = vadd.f32 %v1109_v4, %v495_v43  ;;  %v1111_v10 = vpop.f32.mrb[15].mxu0 }
 0x10b   : > { %v1407_v11 = vmax.f32 %v1108_v3, 0.0  ;;  %v1112_v12 = vadd.f32 %v1111_v10, %v495_v43 }
 0x10c   : > { %v1408_v14 = vmax.f32 %v1110_v9, 0.0 }
 0x10d   : > { %v1409_v0 = vmax.f32 %v1112_v12, 0.0  ;;  %v1604_v15 = vadd.f32 %v1407_v11, %v1406_v6 }
 0x10f   : > { %v1115_v16 = vpop.f32.mrb[16].mxu0  ;;  %1605 = vadd.xlane.f32.xlu0 %v1604_v15  ;;  %v3569_v18 = vadd.f32 %v1409_v0, %v1408_v14 }
 0x110   : > { %v1116_v19 = vadd.f32 %v1115_v16, %v500_v5  ;;  %v1117_v20 = vpop.f32.mrb[17].mxu0 }
 0x111   : > { %v1118_v21 = vadd.f32 %v1117_v20, %v500_v5  ;;  %v1119_v22 = vpop.f32.mrb[18].mxu0 }
 0x112   : > { %v1410_v24 = vmax.f32 %v1116_v19, 0.0  ;;  %v1120_v26 = vadd.f32 %v1119_v22, %v505_v13  ;;  %v1121_v27 = vpop.f32.mrb[19].mxu0 }
 0x113   : > { %v1411_v28 = vmax.f32 %v1118_v21, 0.0  ;;  %v1122_v29 = vadd.f32 %v1121_v27, %v505_v13 }
 0x114   : > { %v1412_v31 = vmax.f32 %v1120_v26, 0.0 }
 0x115   : > { %v1413_v32 = vmax.f32 %v1122_v29, 0.0  ;;  %v3573_v34 = vadd.f32 %v1411_v28, %v1410_v24 }
 0x117   : > { %v1125_v35 = vpop.f32.mrb[20].mxu0  ;;  %v3575_v37 = vadd.f32 %v1413_v32, %v1412_v31 }
 0x118   : > { %v1126_v38 = vadd.f32 %v1125_v35, %v510_v33  ;;  %v1127_v39 = vpop.f32.mrb[21].mxu0 }
 0x119   : > { %v1128_v40 = vadd.f32 %v1127_v39, %v510_v33  ;;  %v1129_v41 = vpop.f32.mrb[22].mxu0 }
 0x11a   : > { %v1414_v42 = vmax.f32 %v1126_v38, 0.0  ;;  %v1130_v43 = vadd.f32 %v1129_v41, %v515_v36  ;;  %v1131_v44 = vpop.f32.mrb[23].mxu0 }
 0x11b   : > { %v1415_v45 = vmax.f32 %v1128_v40, 0.0  ;;  %v1132_v46 = vadd.f32 %v1131_v44, %v515_v36 }
 0x11c   : > { %v1416_v47 = vmax.f32 %v1130_v43, 0.0 }
 0x11d   : > { %v1417_v48 = vmax.f32 %v1132_v46, 0.0  ;;  %v3577_v49 = vadd.f32 %v1415_v45, %v1414_v42 }
 0x11f   : > { %v3579_v50 = vpop.f32.mrb[24].mxu0  ;;  %v3581_v51 = vadd.f32 %v1417_v48, %v1416_v47 }
 0x120   : > { %v3583_v52 = vpop.f32.mrb[25].mxu0 }
 0x121   : > { %v3585_v54 = vpop.f32.mrb[26].mxu0 }
 0x122   : > { %v3587_v55 = vpop.f32.mrb[27].mxu0 }
 0x127   : > { %v3589_v57 = vpop.f32.mrb[28].mxu0 }
 0x128   : > { %v3591_v60 = vpop.f32.mrb[29].mxu0 }
 0x129   : > { %v3593_v61 = vpop.f32.mrb[30].mxu0 }
 0x12a   : > { %v3595_v62 = vpop.f32.mrb[31].mxu0 }
 0x12f   : > { %v1155_v2 = vpop.f32.mrb[32].mxu0 }
 0x130   : > { %v1156_v3 = vadd.f32 %v1155_v2, %v3364_v56  ;;  %v1157_v4 = vpop.f32.mrb[33].mxu0 }
 0x131   : > { %v1158_v5 = vadd.f32 %v1157_v4, %v3364_v56  ;;  %v1159_v6 = vpop.f32.mrb[34].mxu0 }
 0x132   : > { %v1426_v9 = vmax.f32 %v1156_v3, 0.0  ;;  %v1160_v10 = vadd.f32 %v1159_v6, %v3372_v59  ;;  %v1161_v11 = vpop.f32.mrb[35].mxu0 }
 0x133   : > { %v1427_v12 = vmax.f32 %v1158_v5, 0.0  ;;  %v1162_v13 = vadd.f32 %v1161_v11, %v3372_v59 }
 0x134   : > { %v1428_v14 = vmax.f32 %v1160_v10, 0.0 }
 0x135   : > { %v1429_v0 = vmax.f32 %v1162_v13, 0.0  ;;  %v1634_v15 = vadd.f32 %v1427_v12, %v1426_v9 }
 0x137   : > { %v1165_v16 = vpop.f32.mrb[36].mxu0  ;;  %1635 = vadd.xlane.f32.xlu0 %v1634_v15  ;;  %v1637_v19 = vadd.f32 %v1429_v0, %v1428_v14 }
 0x138   : > { %v1166_v20 = vadd.f32 %v1165_v16, %v3383_v63  ;;  %v1167_v21 = vpop.f32.mrb[37].mxu0 }
 0x139   : > { %v1168_v22 = vadd.f32 %v1167_v21, %v3383_v63  ;;  %v1169_v56 = vpop.f32.mrb[38].mxu0  ;;  %1638 = vadd.xlane.f32.xlu1 %v1637_v19 }
 0x13a   : > { %v1430_v24 = vmax.f32 %v1166_v20, 0.0  ;;  %v1170_v26 = vadd.f32 %v1169_v56, %v3386_v1  ;;  %v1171_v27 = vpop.f32.mrb[39].mxu0 }
 0x13b   : > { %v1431_v28 = vmax.f32 %v1168_v22, 0.0  ;;  %v1172_v59 = vadd.f32 %v1171_v27, %v3386_v1 }
 0x13c   : > { %v1432_v29 = vmax.f32 %v1170_v26, 0.0 }
 0x13d   : > { %v1433_v31 = vmax.f32 %v1172_v59, 0.0  ;;  %v1640_v32 = vadd.f32 %v1431_v28, %v1430_v24 }
 0x13f   : > { %v1175_v33 = vpop.f32.mrb[40].mxu0  ;;  %1641 = vadd.xlane.f32.xlu0 %v1640_v32  ;;  %v1643_v35 = vadd.f32 %v1433_v31, %v1432_v29 }
 0x140   : > { %v1176_v36 = vadd.f32 %v1175_v33, %v3401_v7  ;;  %v1177_v38 = vpop.f32.mrb[41].mxu0 }
 0x141   : > { %v1178_v63 = vadd.f32 %v1177_v38, %v3401_v7  ;;  %v1179_v39 = vpop.f32.mrb[42].mxu0  ;;  %1644 = vadd.xlane.f32.xlu1 %v1643_v35 }
 0x142   : > { %v1434_v40 = vmax.f32 %v1176_v36, 0.0  ;;  %v1180_v41 = vadd.f32 %v1179_v39, %v3404_v8  ;;  %v1181_v42 = vpop.f32.mrb[43].mxu0 }
 0x143   : > { %v1435_v43 = vmax.f32 %v1178_v63, 0.0  ;;  %v1182_v1 = vadd.f32 %v1181_v42, %v3404_v8 }
 0x144   : > { %v1436_v44 = vmax.f32 %v1180_v41, 0.0 }
 0x145   : > { %v1437_v45 = vmax.f32 %v1182_v1, 0.0  ;;  %v1646_v46 = vadd.f32 %v1435_v43, %v1434_v40  ;;  %v424_v43 = vld [vmem:[%s4396_s2 + $0xf8] sm:$0xff] }
 0x147   : > { %v1185_v47 = vpop.f32.mrb[44].mxu0  ;;  %1647 = vadd.xlane.f32.xlu0 %v1646_v46  ;;  %v1649_v48 = vadd.f32 %v1437_v45, %v1436_v44  ;;  %v423_v46 = vld [vmem:[%s4396_s2 + $0xf0] sm:$0xff] }
 0x148   : > { %v1186_v2 = vadd.f32 %v1185_v47, %v3410_v25  ;;  %v1187_v3 = vpop.f32.mrb[45].mxu0  ;;  %v408_v47 = vld [vmem:[%s4396_s2 + $0x78] sm:$0xff] }
 0x149   : > { %v1188_v7 = vadd.f32 %v1187_v3, %v3410_v25  ;;  %v1189_v4 = vpop.f32.mrb[46].mxu0  ;;  %1650 = vadd.xlane.f32.xlu1 %v1649_v48  ;;  %v407_v3 = vld [vmem:[%s4396_s2 + $0x70] sm:$0xff] }
 0x14a   : > { %v1438_v5 = vmax.f32 %v1186_v2, 0.0  ;;  %v1190_v6 = vadd.f32 %v1189_v4, %v3412_v30  ;;  %v1191_v9 = vpop.f32.mrb[47].mxu0  ;;  %v1522_v2 = vld [vmem:[#allocation2] sm:$0xff] }
 0x14b   : > { %v1439_v10 = vmax.f32 %v1188_v7, 0.0  ;;  %v1192_v8 = vadd.f32 %v1191_v9, %v3412_v30  ;;  %v442_v7 = vld [vmem:[%s4396_s2 + $0x188] sm:$0xff] }
 0x14c   : > { %v1440_v11 = vmax.f32 %v1190_v6, 0.0  ;;  %v3669_v6 = vpop.f32.mrb[0].mxu1 }
 0x14d   : > { %v1441_v12 = vmax.f32 %v1192_v8, 0.0  ;;  %v1652_v13 = vadd.f32 %v1439_v10, %v1438_v5  ;;  %v1523_v5 = vld [vmem:[#allocation2 + $0x8] sm:$0xff]  ;;  %v3671_v10 = vpop.f32.mrb[1].mxu1 }
 0x14f   : > { %v1195_v14 = vpop.f32.mrb[48].mxu0  ;;  %1653 = vadd.xlane.f32.xlu0 %v1652_v13  ;;  %v1655_v0 = vadd.f32 %v1441_v12, %v1440_v11  ;;  %v441_v11 = vld [vmem:[%s4396_s2 + $0x180] sm:$0xff]  ;;  %v3676_v12 = vpop.f32.mrb[2].mxu1 }
 0x150   : > { %v1196_v15 = vadd.f32 %v1195_v14, %v3561_v53  ;;  %v1197_v16 = vpop.f32.mrb[49].mxu0  ;;  %v426_v14 = vld [vmem:[%s4396_s2 + $0x108] sm:$0xff] }
 0x151   : > { %v1198_v25 = vadd.f32 %v1197_v16, %v3561_v53  ;;  %v1199_v19 = vpop.f32.mrb[50].mxu0  ;;  %1656 = vadd.xlane.f32.xlu1 %v1655_v0  ;;  %v3682_v0 = vpop.f32.mrb[3].mxu1 }
 0x152   : > { %v1442_v20 = vmax.f32 %v1196_v15, 0.0  ;;  %v1200_v21 = vadd.f32 %v1199_v19, %v3563_v58  ;;  %v1201_v22 = vpop.f32.mrb[51].mxu0  ;;  %v425_v19 = vld [vmem:[%s4396_s2 + $0x100] sm:$0xff] }
 0x153   : > { %v1443_v56 = vmax.f32 %v1198_v25, 0.0  ;;  %v1202_v30 = vadd.f32 %v1201_v22, %v3563_v58  ;;  %v1524_v25 = vld [vmem:[#allocation2 + $0x10] sm:$0xff] }
 0x154   : > { %v1444_v24 = vmax.f32 %v1200_v21, 0.0  ;;  %v444_v21 = vld [vmem:[%s4396_s2 + $0x198] sm:$0xff] }
 0x155   : > { %v1445_v26 = vmax.f32 %v1202_v30, 0.0  ;;  %1608 = vadd.xlane.f32.xlu1 %v3569_v18  ;;  %v1658_v27 = vadd.f32 %v1443_v56, %v1442_v20  ;;  %v1525_v30 = vld [vmem:[#allocation2 + $0x18] sm:$0xff] }
 0x157   : > { %v1205_v28 = vpop.f32.mrb[52].mxu0  ;;  %1659 = vadd.xlane.f32.xlu0 %v1658_v27  ;;  %v1661_v59 = vadd.f32 %v1445_v26, %v1444_v24  ;;  %v3699_v24 = vpop.f32.mrb[4].mxu1 }
 0x158   : > { %v1206_v29 = vadd.f32 %v1205_v28, %v3567_v17  ;;  %v1207_v53 = vpop.f32.mrb[53].mxu0  ;;  %v3701_v27 = vpop.f32.mrb[5].mxu1 }
 0x159   : > { %v1208_v31 = vadd.f32 %v1207_v53, %v3567_v17  ;;  %v1209_v32 = vpop.f32.mrb[54].mxu0  ;;  %1662 = vadd.xlane.f32.xlu1 %v1661_v59  ;;  %v422_v17 = vld [vmem:[%s4396_s2 + $0xe8] sm:$0xff]  ;;  %v443_v59 = vld [vmem:[%s4396_s2 + $0x190] sm:$0xff] }
 0x15a   : > { %v1446_v33 = vmax.f32 %v1206_v29, 0.0  ;;  %v1210_v35 = vadd.f32 %v1209_v32, %v3571_v23  ;;  %v1211_v36 = vpop.f32.mrb[55].mxu0  ;;  %v3706_v29 = vpop.f32.mrb[6].mxu1 }
 0x15b   : > { %v1447_v58 = vmax.f32 %v1208_v31, 0.0  ;;  %v1212_v38 = vadd.f32 %v1211_v36, %v3571_v23  ;;  %1611 = vadd.xlane.f32.xlu0 %v3573_v34  ;;  %v428_v31 = vld [vmem:[%s4396_s2 + $0x118] sm:$0xff]  ;;  %v3712_v32 = vpop.f32.mrb[7].mxu1  ;;  %v1526_v36 = vld [vmem:[#allocation2 + $0x20] sm:$0xff] }
 0x15c   : > { %v1448_v18 = vmax.f32 %v1210_v35, 0.0 }
 0x15d   : > { %v1449_v63 = vmax.f32 %v1212_v38, 0.0  ;;  %1614 = vadd.xlane.f32.xlu1 %v3575_v37  ;;  %v1664_v39 = vadd.f32 %v1447_v58, %v1446_v33  ;;  %v421_v37 = vld [vmem:[%s4396_s2 + $0xe0] sm:$0xff]  ;;  %v427_v58 = vld [vmem:[%s4396_s2 + $0x110] sm:$0xff] }
 0x15f   : > { %1665 = vadd.xlane.f32.xlu0 %v1664_v39  ;;  %v1667_v40 = vadd.f32 %v1449_v63, %v1448_v18  ;;  %v3629_v41 = vpop.f32.mrb[56].mxu0  ;;  %v446_v18 = vld [vmem:[%s4396_s2 + $0x1a8] sm:$0xff] }
 0x160   : > { %v3631_v23 = vpop.f32.mrb[57].mxu0 }
 0x161   : > { %1668 = vadd.xlane.f32.xlu1 %v1667_v40  ;;  %v3633_v34 = vpop.f32.mrb[58].mxu0  ;;  %v1527_v40 = vld [vmem:[#allocation2 + $0x28] sm:$0xff] }
 0x162   : > { %v3638_v42 = vpop.f32.mrb[59].mxu0 }
 0x163   : > { %1617 = vadd.xlane.f32.xlu0 %v3577_v49  ;;  %v406_v49 = vld [vmem:[%s4396_s2 + $0x68] sm:$0xff] }
 0x165   : > { %1620 = vadd.xlane.f32.xlu1 %v3581_v51  ;;  %v405_v51 = vld [vmem:[%s4396_s2 + $0x60] sm:$0xff] }
 0x167   : > { %v3649_v1 = vpop.f32.mrb[60].mxu0 }
 0x168   : > { %v3651_v44 = vpop.f32.mrb[61].mxu0 }
 0x169   : > { %v3653_v45 = vpop.f32.mrb[62].mxu0 }
 0x16a   : > { %v3661_v48 = vpop.f32.mrb[63].mxu0 }
 0x16f   : > { %v3684_v15 = vpop.f32.mrb[64].mxu0 }
 0x170   : > { %v3687_v16 = vpop.f32.mrb[65].mxu0 }
 0x171   : > { %v3692_v20 = vpop.f32.mrb[66].mxu0 }
 0x172   : > { %v3697_v22 = vpop.f32.mrb[67].mxu0 }
 0x176   : > { %604 = vperm.xlu1 %2964, %v422_v17   ;;  %v3729_v17 = vpop.f32.mrb[8].mxu1 }
 0x177   : > { %v3714_v33 = vpop.f32.mrb[68].mxu0 }
 0x178   : > { %v3717_v35 = vpop.f32.mrb[69].mxu0 }
 0x179   : > { %599 = vperm.xlu0 %2963, %v421_v37   ;;  %v3722_v38 = vpop.f32.mrb[70].mxu0 }
 0x17a   : > { %524 = vperm.xlu1 %2964, %v406_v49   ;;  %v3727_v63 = vpop.f32.mrb[71].mxu0  ;;  %v3731_v49 = vpop.f32.mrb[9].mxu1 }
 0x17d   : > { %519 = vperm.xlu0 %2963, %v405_v51  }
 0x17e   : > { %614 = vperm.xlu1 %2964, %v424_v43   ;;  %v445_v43 = vld [vmem:[%s4396_s2 + $0x1a0] sm:$0xff] }
 0x181   : > { %609 = vperm.xlu0 %2963, %v423_v46   ;;  %v3736_v46 = vpop.f32.mrb[10].mxu1 }
 0x182   : > { %534 = vperm.xlu1 %2964, %v408_v47  }
 0x184   : > { %v1588_v4 = vpop.xlane.xlu0 %1587 }
 0x185   : > { %v1778_v9 = vadd.f32 %v1588_v4, %v1522_v2  ;;  %529 = vperm.xlu0 %2963, %v407_v3   ;;  %v430_v2 = vld [vmem:[%s4396_s2 + $0x128] sm:$0xff]  ;;  %v3742_v3 = vpop.f32.mrb[11].mxu1 }
 0x186   : > { %704 = vperm.xlu1 %2964, %v442_v7   ;;  %v1591_v8 = vpop.xlane.xlu1 %1590  ;;  %v3744_v7 = vpop.f32.mrb[72].mxu0 }
 0x187   : > { %1843 = vst.msk [vmem:[#allocation2] sm:$0xff] %vm258_vm2, %v1778_v9  ;;  %v1779_v13 = vadd.f32 %v1591_v8, %v1523_v5  ;;  %v3747_v4 = vpop.f32.mrb[73].mxu0  ;;  %v1528_v5 = vld [vmem:[#allocation2 + $0x30] sm:$0xff]  ;;  %v429_v9 = vld [vmem:[%s4396_s2 + $0x120] sm:$0xff] }
 0x188   : > { %v3752_v8 = vpop.f32.mrb[74].mxu0 }
 0x189   : > { %1844 = vst.msk [vmem:[#allocation2 + $0x8] sm:$0xff] %vm258_vm2, %v1779_v13  ;;  %699 = vperm.xlu0 %2963, %v441_v11   ;;  %v448_v11 = vld [vmem:[%s4396_s2 + $0x1b8] sm:$0xff]  ;;  %v3757_v13 = vpop.f32.mrb[75].mxu0 }
 0x18a   : > { %624 = vperm.xlu1 %2964, %v426_v14  }
 0x18c   : > { %v1594_v56 = vpop.xlane.xlu0 %1593 }
 0x18d   : > { %v1780_v26 = vadd.f32 %v1594_v56, %v1524_v25  ;;  %619 = vperm.xlu0 %2963, %v425_v19   ;;  %v3759_v25 = vpop.f32.mrb[12].mxu1  ;;  %v447_v56 = vld [vmem:[%s4396_s2 + $0x1b0] sm:$0xff] }
 0x18e   : > { %714 = vperm.xlu1 %2964, %v444_v21   ;;  %v1597_v28 = vpop.xlane.xlu1 %1596  ;;  %v3761_v21 = vpop.f32.mrb[13].mxu1 }
 0x18f   : > { %1845 = vst.msk [vmem:[#allocation2 + $0x10] sm:$0xff] %vm258_vm2, %v1780_v26  ;;  %v1781_v53 = vadd.f32 %v1597_v28, %v1525_v30  ;;  %4400 = vst [vmem:[#allocation3_spill] sm:$0xff] %v3761_v21  ;;  %v3766_v30 = vpop.f32.mrb[14].mxu1  ;;  %v432_v26 = vld [vmem:[%s4396_s2 + $0x138] sm:$0xff] }
 0x190   : > { %v3772_v28 = vpop.f32.mrb[15].mxu1 }
 0x191   : > { %1846 = vst.msk [vmem:[#allocation2 + $0x18] sm:$0xff] %vm258_vm2, %v1781_v53  ;;  %709 = vperm.xlu0 %2963, %v443_v59   ;;  %v3774_v59 = vpop.f32.mrb[76].mxu0 }
 0x192   : > { %634 = vperm.xlu1 %2964, %v428_v31   ;;  %4401 = vst [vmem:[#allocation4_spill] sm:$0xff] %v3774_v59  ;;  %v3776_v53 = vpop.f32.mrb[77].mxu0  ;;  %v431_v31 = vld [vmem:[%s4396_s2 + $0x130] sm:$0xff]  ;;  %v1543_v59 = vld [vmem:[#allocation2 + $0xa8] sm:$0xff] }
 0x193   : > { %4402 = vst [vmem:[#allocation5_spill] sm:$0xff] %v3776_v53 }
 0x194   : > { %v1600_v39 = vpop.xlane.xlu0 %1599 }
 0x195   : > { %v1782_v37 = vadd.f32 %v1600_v39, %v1526_v36  ;;  %629 = vperm.xlu0 %2963, %v427_v58   ;;  %v3781_v36 = vpop.f32.mrb[78].mxu0  ;;  %v450_v58 = vld [vmem:[%s4396_s2 + $0x1c8] sm:$0xff]  ;;  %v3788_v39 = vpop.f32.mrb[16].mxu1 }
 0x196   : > { %724 = vperm.xlu1 %2964, %v446_v18   ;;  %v1603_v51 = vpop.xlane.xlu1 %1602  ;;  %4403 = vst [vmem:[#allocation6_spill] sm:$0xff] %v3781_v36  ;;  %v3786_v18 = vpop.f32.mrb[79].mxu0  ;;  %4405 = vst [vmem:[#allocation8_spill] sm:$0xff] %v3788_v39  ;;  %v1911_v39 = vld [vmem:[#allocation2 + $0x8] sm:$0xff] }
 0x197   : > { %1847 = vst.msk [vmem:[#allocation2 + $0x20] sm:$0xff] %vm258_vm2, %v1782_v37  ;;  %v1783_v47 = vadd.f32 %v1603_v51, %v1527_v40  ;;  %4404 = vst [vmem:[#allocation7_spill] sm:$0xff] %v3786_v18  ;;  %v3790_v40 = vpop.f32.mrb[17].mxu1  ;;  %v449_v37 = vld [vmem:[%s4396_s2 + $0x1c0] sm:$0xff] }
 0x198   : > { %4406 = vst [vmem:[#allocation9_spill] sm:$0xff] %v3790_v40  ;;  %v3795_v51 = vpop.f32.mrb[18].mxu1 }
 0x199   : > { %1848 = vst.msk [vmem:[#allocation2 + $0x28] sm:$0xff] %vm258_vm2, %v1783_v47  ;;  %719 = vperm.xlu0 %2963, %v445_v43   ;;  %4407 = vst [vmem:[#allocation10_spill] sm:$0xff] %v3795_v51  ;;  %v434_v43 = vld [vmem:[%s4396_s2 + $0x148] sm:$0xff]  ;;  %v3800_v47 = vpop.f32.mrb[19].mxu1 }
 0x19a   : > { %644 = vperm.xlu1 %2964, %v430_v2   ;;  %4408 = vst [vmem:[#allocation11_spill] sm:$0xff] %v3800_v47  ;;  %v3802_v2 = vpop.f32.mrb[80].mxu0 }
 0x19b   : > { %4409 = vst [vmem:[#allocation12_spill] sm:$0xff] %v3802_v2 }
 0x19c   : > { %v1606_v14 = vpop.xlane.xlu0 %1605 }
 0x19d   : > { %v1784_v19 = vadd.f32 %v1606_v14, %v1528_v5  ;;  %639 = vperm.xlu0 %2963, %v429_v9   ;;  %v3804_v5 = vpop.f32.mrb[81].mxu0  ;;  %v433_v9 = vld [vmem:[%s4396_s2 + $0x140] sm:$0xff]  ;;  %v452_v14 = vld [vmem:[%s4396_s2 + $0x1d8] sm:$0xff] }
 0x19e   : > { %734 = vperm.xlu1 %2964, %v448_v11   ;;  %4410 = vst [vmem:[#allocation13_spill] sm:$0xff] %v3804_v5  ;;  %v3809_v11 = vpop.f32.mrb[82].mxu0 }
 0x19f   : > { %1849 = vst.msk [vmem:[#allocation2 + $0x30] sm:$0xff] %vm258_vm2, %v1784_v19  ;;  %4411 = vst [vmem:[#allocation14_spill] sm:$0xff] %v3809_v11  ;;  %v3814_v19 = vpop.f32.mrb[83].mxu0 }
 0x1a0   : > { %4412 = vst [vmem:[#allocation15_spill] sm:$0xff] %v3814_v19  ;;  %v3830_v5 = vpop.f32.mrb[84].mxu0  ;;  %v1539_v19 = vld [vmem:[#allocation2 + $0x88] sm:$0xff] }
 0x1a1   : > { %729 = vperm.xlu0 %2963, %v447_v56   ;;  %v3816_v56 = vpop.f32.mrb[20].mxu1  ;;  %4417 = vst [vmem:[#allocation20_spill] sm:$0xff] %v3830_v5 }
 0x1a2   : > { %654 = vperm.xlu1 %2964, %v432_v26   ;;  %4413 = vst [vmem:[#allocation16_spill] sm:$0xff] %v3816_v56  ;;  %v3818_v26 = vpop.f32.mrb[21].mxu1  ;;  %v3832_v56 = vpop.f32.mrb[85].mxu0 }
 0x1a3   : > { %4414 = vst [vmem:[#allocation17_spill] sm:$0xff] %v3818_v26  ;;  %4418 = vst [vmem:[#allocation21_spill] sm:$0xff] %v3832_v56  ;;  %v454_v26 = vld [vmem:[%s4396_s2 + $0x1e8] sm:$0xff] }
 0x1a4   : > { %v438_v56 = vld [vmem:[%s4396_s2 + $0x168] sm:$0xff] }
 0x1a5   : > { %649 = vperm.xlu0 %2963, %v431_v31   ;;  %v451_v31 = vld [vmem:[%s4396_s2 + $0x1d0] sm:$0xff] }
 0x1a6   : > { %744 = vperm.xlu1 %2964, %v450_v58   ;;  %v3823_v58 = vpop.f32.mrb[22].mxu1 }
 0x1a7   : > { %4415 = vst [vmem:[#allocation18_spill] sm:$0xff] %v3823_v58 }
 0x1a9   : > { %739 = vperm.xlu0 %2963, %v449_v37   ;;  %v436_v37 = vld [vmem:[%s4396_s2 + $0x158] sm:$0xff] }
 0x1aa   : > { %664 = vperm.xlu1 %2964, %v434_v43   ;;  %v3828_v43 = vpop.f32.mrb[23].mxu1 }
 0x1ab   : > { %4416 = vst [vmem:[#allocation19_spill] sm:$0xff] %v3828_v43  ;;  %v3844_v2 = vpop.f32.mrb[24].mxu1 }
 0x1ac   : > { %4421 = vst [vmem:[#allocation24_spill] sm:$0xff] %v3844_v2  ;;  %v3846_v5 = vpop.f32.mrb[25].mxu1 }
 0x1ad   : > { %659 = vperm.xlu0 %2963, %v433_v9   ;;  %v435_v9 = vld [vmem:[%s4396_s2 + $0x150] sm:$0xff]  ;;  %4422 = vst [vmem:[#allocation25_spill] sm:$0xff] %v3846_v5  ;;  %v456_v5 = vld [vmem:[%s4396_s2 + $0x1f8] sm:$0xff] }
 0x1ae   : > { %754 = vperm.xlu1 %2964, %v452_v14   ;;  %v3837_v14 = vpop.f32.mrb[86].mxu0 }
 0x1af   : > { %4419 = vst [vmem:[#allocation22_spill] sm:$0xff] %v3837_v14  ;;  %v3842_v58 = vpop.f32.mrb[87].mxu0 }
 0x1b0   : > { %4420 = vst [vmem:[#allocation23_spill] sm:$0xff] %v3842_v58  ;;  %v3858_v43 = vpop.f32.mrb[88].mxu0 }
 0x1b1   : > { %749 = vperm.xlu0 %2963, %v451_v31   ;;  %v453_v31 = vld [vmem:[%s4396_s2 + $0x1e0] sm:$0xff]  ;;  %4425 = vst [vmem:[#allocation28_spill] sm:$0xff] %v3858_v43  ;;  %v3860_v2 = vpop.f32.mrb[89].mxu0 }
 0x1b2   : > { %674 = vperm.xlu1 %2964, %v436_v37   ;;  %v3851_v37 = vpop.f32.mrb[26].mxu1  ;;  %4426 = vst [vmem:[#allocation29_spill] sm:$0xff] %v3860_v2  ;;  %v440_v2 = vld [vmem:[%s4396_s2 + $0x178] sm:$0xff] }
 0x1b3   : > { %4423 = vst [vmem:[#allocation26_spill] sm:$0xff] %v3851_v37  ;;  %v3856_v14 = vpop.f32.mrb[27].mxu1 }
 0x1b4   : > { %4424 = vst [vmem:[#allocation27_spill] sm:$0xff] %v3856_v14  ;;  %v3872_v58 = vpop.f32.mrb[28].mxu1 }
 0x1b5   : > { %669 = vperm.xlu0 %2963, %v435_v9   ;;  %v3865_v9 = vpop.f32.mrb[90].mxu0  ;;  %4429 = vst [vmem:[#allocation32_spill] sm:$0xff] %v3872_v58  ;;  %v3874_v43 = vpop.f32.mrb[29].mxu1 }
 0x1b6   : > { %764 = vperm.xlu1 %2964, %v454_v26   ;;  %v437_v26 = vld [vmem:[%s4396_s2 + $0x160] sm:$0xff]  ;;  %4427 = vst [vmem:[#allocation30_spill] sm:$0xff] %v3865_v9  ;;  %v3870_v37 = vpop.f32.mrb[91].mxu0  ;;  %4430 = vst [vmem:[#allocation33_spill] sm:$0xff] %v3874_v43 }
 0x1b7   : > { %4428 = vst [vmem:[#allocation31_spill] sm:$0xff] %v3870_v37  ;;  %v3886_v14 = vpop.f32.mrb[92].mxu0 }
 0x1b8   : > { %4433 = vst [vmem:[#allocation36_spill] sm:$0xff] %v3886_v14  ;;  %v3888_v58 = vpop.f32.mrb[93].mxu0  ;;  %v1541_v14 = vld [vmem:[#allocation2 + $0x98] sm:$0xff] }
 0x1b9   : > { %759 = vperm.xlu0 %2963, %v453_v31   ;;  %v3879_v31 = vpop.f32.mrb[30].mxu1  ;;  %4434 = vst [vmem:[#allocation37_spill] sm:$0xff] %v3888_v58  ;;  %v3893_v43 = vpop.f32.mrb[94].mxu0 }
 0x1ba   : > { %684 = vperm.xlu1 %2964, %v438_v56   ;;  %v455_v56 = vld [vmem:[%s4396_s2 + $0x1f0] sm:$0xff]  ;;  %4431 = vst [vmem:[#allocation34_spill] sm:$0xff] %v3879_v31  ;;  %v3884_v9 = vpop.f32.mrb[31].mxu1  ;;  %4435 = vst [vmem:[#allocation38_spill] sm:$0xff] %v3893_v43  ;;  %v3895_v31 = vpop.f32.mrb[95].mxu0  ;;  %v1910_v43 = vld [vmem:[#allocation2] sm:$0xff] }
 0x1bb   : > { %4432 = vst [vmem:[#allocation35_spill] sm:$0xff] %v3884_v9  ;;  %4436 = vst [vmem:[#allocation39_spill] sm:$0xff] %v3895_v31 }
 0x1bd   : > { %679 = vperm.xlu0 %2963, %v437_v26   ;;  %v1538_v26 = vld [vmem:[#allocation2 + $0x80] sm:$0xff] }
 0x1be   : > { %774 = vperm.xlu1 %2964, %v456_v5   ;;  %v439_v5 = vld [vmem:[%s4396_s2 + $0x170] sm:$0xff] }
 0x1c1   : > { %769 = vperm.xlu0 %2963, %v455_v56  }
 0x1c2   : > { %694 = vperm.xlu1 %2964, %v440_v2   ;;  %v1540_v2 = vld [vmem:[#allocation2 + $0x90] sm:$0xff] }
 0x1c4   : > { %v1636_v37 = vpop.xlane.xlu0 %1635 }
 0x1c5   : > { %v1794_v11 = vadd.f32 %v1636_v37, %v1538_v26  ;;  %689 = vperm.xlu0 %2963, %v439_v5   ;;  %v1975_v37 = vmul.f32 0.00390625, %v1911_v39  ;;  %v1912_v39 = vld [vmem:[#allocation2 + $0x10] sm:$0xff] }
 0x1c6   : > { %v1639_v9 = vpop.xlane.xlu1 %1638 }
 0x1c7   : > { %1859 = vst.msk [vmem:[#allocation2 + $0x80] sm:$0xff] %vm258_vm2, %v1794_v11  ;;  %v1795_v56 = vadd.f32 %v1639_v9, %v1539_v19  ;;  %v1542_v19 = vld [vmem:[#allocation2 + $0xa0] sm:$0xff]  ;;  %v1974_v9 = vmul.f32 0.00390625, %v1910_v43  ;;  %v1544_v43 = vld [vmem:[#allocation2 + $0xb0] sm:$0xff] }
 0x1c9   : > { %1860 = vst.msk [vmem:[#allocation2 + $0x88] sm:$0xff] %vm258_vm2, %v1795_v56  ;;  %v2038_v18 = vpack.c.bf16 %v1975_v37, %v1974_v9 }
 0x1cc   : > { %v1642_v58 = vpop.xlane.xlu0 %1641 }
 0x1cd   : > { %v1796_v40 = vadd.f32 %v1642_v58, %v1540_v2  ;;  %v1913_v2 = vld [vmem:[#allocation2 + $0x18] sm:$0xff] }
 0x1ce   : > { %v1645_v47 = vpop.xlane.xlu1 %1644  ;;  %v1926_v51 = vld [vmem:[#allocation2 + $0x80] sm:$0xff] }
 0x1cf   : > { %1861 = vst.msk [vmem:[#allocation2 + $0x90] sm:$0xff] %vm258_vm2, %v1796_v40  ;;  %v1797_v31 = vadd.f32 %v1645_v47, %v1541_v14  ;;  %v1990_v26 = vmul.f32 0.00390625, %v1926_v51 }
 0x1d0   : > { %v1927_v53 = vld [vmem:[#allocation2 + $0x88] sm:$0xff] }
 0x1d1   : > { %1862 = vst.msk [vmem:[#allocation2 + $0x98] sm:$0xff] %vm258_vm2, %v1797_v31  ;;  %v1991_v11 = vmul.f32 0.00390625, %v1927_v53  ;;  %v1977_v31 = vmul.f32 0.00390625, %v1913_v2  ;;  %v1529_v2 = vld [vmem:[#allocation2 + $0x38] sm:$0xff] }
 0x1d3   : > { %v2046_v5 = vpack.c.bf16 %v1991_v11, %v1990_v26  ;;  %v1976_v26 = vmul.f32 0.00390625, %v1912_v39 }
 0x1d4   : > { %v1648_v56 = vpop.xlane.xlu0 %1647 }
 0x1d5   : > { %v1798_v58 = vadd.f32 %v1648_v56, %v1542_v19  ;;  %2807 = vmatprep.subr.bf16.mxu1 %v2046_v5  ;;  %v1545_v19 = vld [vmem:[#allocation2 + $0xb8] sm:$0xff]  ;;  %v2039_v9 = vpack.c.bf16 %v1977_v31, %v1976_v26 }
 0x1d6   : > { %v1651_v36 = vpop.xlane.xlu1 %1650  ;;  %2808 = vmatpush3.bf16.msra.mxu1 %v2038_v18  ;;  %v1928_v40 = vld [vmem:[#allocation2 + $0x90] sm:$0xff]  ;;  %v1915_v18 = vld [vmem:[#allocation2 + $0x28] sm:$0xff] }
 0x1d7   : > { %1863 = vst.msk [vmem:[#allocation2 + $0xa0] sm:$0xff] %vm258_vm2, %v1798_v58  ;;  %v1799_v47 = vadd.f32 %v1651_v36, %v1543_v59  ;;  %v1992_v53 = vmul.f32 0.00390625, %v1928_v40  ;;  %v1914_v36 = vld [vmem:[#allocation2 + $0x20] sm:$0xff]  ;;  %v1979_v40 = vmul.f32 0.00390625, %v1915_v18 }
 0x1d8   : > { %v1929_v14 = vld [vmem:[#allocation2 + $0x98] sm:$0xff]  ;;  %v1978_v31 = vmul.f32 0.00390625, %v1914_v36 }
 0x1d9   : > { %1864 = vst.msk [vmem:[#allocation2 + $0xa8] sm:$0xff] %vm258_vm2, %v1799_v47  ;;  %v1993_v51 = vmul.f32 0.00390625, %v1929_v14 }
 0x1db   : > { %v2047_v11 = vpack.c.bf16 %v1993_v51, %v1992_v53  ;;  %v1546_v51 = vld [vmem:[#allocation2 + $0xc0] sm:$0xff] }
 0x1dc   : > { %v1654_v37 = vpop.xlane.xlu0 %1653 }
 0x1dd   : > { %v1800_v5 = vadd.f32 %v1654_v37, %v1544_v43  ;;  %2809 = vmatprep.subr.bf16.mxu1 %v2047_v11  ;;  %v1547_v37 = vld [vmem:[#allocation2 + $0xc8] sm:$0xff] }
 0x1de   : > { %v1657_v56 = vpop.xlane.xlu1 %1656  ;;  %2810 = vmatpush3.bf16.msra.mxu1 %v2039_v9  ;;  %v1930_v58 = vld [vmem:[#allocation2 + $0xa0] sm:$0xff]  ;;  %v2040_v9 = vpack.c.bf16 %v1979_v40, %v1978_v31 }
 0x1df   : > { %1865 = vst.msk [vmem:[#allocation2 + $0xb0] sm:$0xff] %vm258_vm2, %v1800_v5  ;;  %v1801_v59 = vadd.f32 %v1657_v56, %v1545_v19  ;;  %v1994_v39 = vmul.f32 0.00390625, %v1930_v58  ;;  %v1530_v56 = vld [vmem:[#allocation2 + $0x40] sm:$0xff] }
 0x1e0   : > { %v1931_v47 = vld [vmem:[#allocation2 + $0xa8] sm:$0xff] }
 0x1e1   : > { %1866 = vst.msk [vmem:[#allocation2 + $0xb8] sm:$0xff] %vm258_vm2, %v1801_v59  ;;  %v1995_v14 = vmul.f32 0.00390625, %v1931_v47  ;;  %v1531_v47 = vld [vmem:[#allocation2 + $0x48] sm:$0xff] }
 0x1e2   : > { %v1609_v53 = vpop.xlane.xlu1 %1608 }
 0x1e3   : > { %v1785_v43 = vadd.f32 %v1609_v53, %v1529_v2  ;;  %v2048_v26 = vpack.c.bf16 %v1995_v14, %v1994_v39  ;;  %v1548_v14 = vld [vmem:[#allocation2 + $0xd0] sm:$0xff] }
 0x1e4   : > { %v1660_v11 = vpop.xlane.xlu0 %1659  ;;  %v1916_v53 = vld [vmem:[#allocation2 + $0x30] sm:$0xff] }
 0x1e5   : > { %1850 = vst.msk [vmem:[#allocation2 + $0x38] sm:$0xff] %vm258_vm2, %v1785_v43  ;;  %v1802_v5 = vadd.f32 %v1660_v11, %v1546_v51  ;;  %2811 = vmatprep.subr.bf16.mxu1 %v2048_v26  ;;  %v1549_v26 = vld [vmem:[#allocation2 + $0xd8] sm:$0xff] }
 0x1e6   : > { %v1663_v19 = vpop.xlane.xlu1 %1662  ;;  %2812 = vmatpush3.bf16.msra.mxu1 %v2040_v9  ;;  %v1932_v18 = vld [vmem:[#allocation2 + $0xb0] sm:$0xff]  ;;  %v1980_v9 = vmul.f32 0.00390625, %v1916_v53 }
 0x1e7   : > { %1867 = vst.msk [vmem:[#allocation2 + $0xc0] sm:$0xff] %vm258_vm2, %v1802_v5  ;;  %v1803_v58 = vadd.f32 %v1663_v19, %v1547_v37  ;;  %v1996_v2 = vmul.f32 0.00390625, %v1932_v18 }
 0x1e8   : > { %v1612_v59 = vpop.xlane.xlu0 %1611  ;;  %v1933_v21 = vld [vmem:[#allocation2 + $0xb8] sm:$0xff] }
 0x1e9   : > { %1868 = vst.msk [vmem:[#allocation2 + $0xc8] sm:$0xff] %vm258_vm2, %v1803_v58  ;;  %v1786_v36 = vadd.f32 %v1612_v59, %v1530_v56  ;;  %v1997_v39 = vmul.f32 0.00390625, %v1933_v21  ;;  %v1532_v56 = vld [vmem:[#allocation2 + $0x50] sm:$0xff] }
 0x1ea   : > { %v1615_v40 = vpop.xlane.xlu1 %1614 }
 0x1eb   : > { %1851 = vst.msk [vmem:[#allocation2 + $0x40] sm:$0xff] %vm258_vm2, %v1786_v36  ;;  %v1787_v51 = vadd.f32 %v1615_v40, %v1531_v47  ;;  %v2049_v31 = vpack.c.bf16 %v1997_v39, %v1996_v2  ;;  %v1533_v36 = vld [vmem:[#allocation2 + $0x58] sm:$0xff] }
 0x1ec   : > { %v1666_v43 = vpop.xlane.xlu0 %1665  ;;  %v1917_v11 = vld [vmem:[#allocation2 + $0x38] sm:$0xff] }
 0x1ed   : > { %1852 = vst.msk [vmem:[#allocation2 + $0x48] sm:$0xff] %vm258_vm2, %v1787_v51  ;;  %v1804_v37 = vadd.f32 %v1666_v43, %v1548_v14  ;;  %2813 = vmatprep.subr.bf16.mxu1 %v2049_v31  ;;  %v1981_v5 = vmul.f32 0.00390625, %v1917_v11 }
 0x1ee   : > { %v1669_v19 = vpop.xlane.xlu1 %1668  ;;  %v1934_v18 = vld [vmem:[#allocation2 + $0xc0] sm:$0xff] }
 0x1ef   : > { %1869 = vst.msk [vmem:[#allocation2 + $0xd0] sm:$0xff] %vm258_vm2, %v1804_v37  ;;  %v1805_v21 = vadd.f32 %v1669_v19, %v1549_v26  ;;  %v2041_v58 = vpack.c.bf16 %v1981_v5, %v1980_v9  ;;  %v1998_v39 = vmul.f32 0.00390625, %v1934_v18 }
 0x1f0   : > { %v1618_v59 = vpop.xlane.xlu0 %1617  ;;  %v1935_v47 = vld [vmem:[#allocation2 + $0xc8] sm:$0xff] }
 0x1f1   : > { %1870 = vst.msk [vmem:[#allocation2 + $0xd8] sm:$0xff] %vm258_vm2, %v1805_v21  ;;  %v1788_v2 = vadd.f32 %v1618_v59, %v1532_v56  ;;  %2814 = vmatpush3.bf16.msra.mxu1 %v2041_v58  ;;  %v1999_v40 = vmul.f32 0.00390625, %v1935_v47 }
 0x1f2   : > { %v1621_v14 = vpop.xlane.xlu1 %1620  ;;  %v1918_v51 = vld [vmem:[#allocation2 + $0x40] sm:$0xff] }
 0x1f3   : > { %1853 = vst.msk [vmem:[#allocation2 + $0x50] sm:$0xff] %vm258_vm2, %v1788_v2  ;;  %v1789_v53 = vadd.f32 %v1621_v14, %v1533_v36  ;;  %v2050_v31 = vpack.c.bf16 %v1999_v40, %v1998_v39  ;;  %v1982_v26 = vmul.f32 0.00390625, %v1918_v51 }
 0x1f4   : > { %v1919_v43 = vld [vmem:[#allocation2 + $0x48] sm:$0xff] }
 0x1f5   : > { %1854 = vst.msk [vmem:[#allocation2 + $0x58] sm:$0xff] %vm258_vm2, %v1789_v53  ;;  %2815 = vmatprep.subr.bf16.mxu1 %v2050_v31  ;;  %v1983_v11 = vmul.f32 0.00390625, %v1919_v43 }
 0x1f6   : > { %v605_v37 = vpop.permute.xlu1 %604  ;;  %v1936_v56 = vld [vmem:[#allocation2 + $0xd0] sm:$0xff] }
 0x1f7   : > { %v1220_v9 = vadd.f32 %v3633_v34, %v605_v37  ;;  %v1222_v5 = vadd.f32 %v3638_v42, %v605_v37  ;;  %v2042_v19 = vpack.c.bf16 %v1983_v11, %v1982_v26  ;;  %v2000_v39 = vmul.f32 0.00390625, %v1936_v56 }
 0x1f8   : > { %v600_v18 = vpop.permute.xlu0 %599  ;;  %v1937_v21 = vld [vmem:[#allocation2 + $0xd8] sm:$0xff] }
 0x1f9   : > { %v1452_v58 = vmax.f32 %v1220_v9, 0.0  ;;  %v1453_v59 = vmax.f32 %v1222_v5, 0.0  ;;  %v1216_v36 = vadd.f32 %v3629_v41, %v600_v18  ;;  %v1218_v47 = vadd.f32 %v3631_v23, %v600_v18  ;;  %2816 = vmatpush3.bf16.msra.mxu1 %v2042_v19 }
 0x1fa   : > { %v525_v2 = vpop.permute.xlu1 %524  ;;  %v2001_v40 = vmul.f32 0.00390625, %v1937_v21  ;;  %v1920_v53 = vld [vmem:[#allocation2 + $0x50] sm:$0xff] }
 0x1fb   : > { %v1450_v14 = vmax.f32 %v1216_v36, 0.0  ;;  %v1451_v51 = vmax.f32 %v1218_v47, 0.0  ;;  %v1140_v34 = vadd.f32 %v3585_v54, %v525_v2  ;;  %v1142_v42 = vadd.f32 %v3587_v55, %v525_v2 }
 0x1fc   : > { %v520_v31 = vpop.permute.xlu0 %519  ;;  %v1673_v43 = vadd.f32 %v1453_v59, %v1452_v58  ;;  %v2051_v26 = vpack.c.bf16 %v2001_v40, %v2000_v39  ;;  %v1921_v11 = vld [vmem:[#allocation2 + $0x58] sm:$0xff]  ;;  %v1984_v56 = vmul.f32 0.00390625, %v1920_v53 }
 0x1fd   : > { %v1420_v37 = vmax.f32 %v1140_v34, 0.0  ;;  %v1421_v9 = vmax.f32 %v1142_v42, 0.0  ;;  %v1136_v41 = vadd.f32 %v3579_v50, %v520_v31  ;;  %v1138_v23 = vadd.f32 %v3583_v52, %v520_v31 }
 0x1fe   : > { %1674 = vadd.xlane.f32.xlu1 %v1673_v43  ;;  %2817 = vmatprep.subr.bf16.mxu1 %v2051_v26  ;;  %v615_v5 = vpop.permute.xlu1 %614  ;;  %v1670_v19 = vadd.f32 %v1451_v51, %v1450_v14  ;;  %v1985_v18 = vmul.f32 0.00390625, %v1921_v11 }
 0x1ff   : > { %v1418_v54 = vmax.f32 %v1136_v41, 0.0  ;;  %v1419_v21 = vmax.f32 %v1138_v23, 0.0  ;;  %v1230_v55 = vadd.f32 %v3653_v45, %v615_v5  ;;  %v1232_v58 = vadd.f32 %v3661_v48, %v615_v5 }
 0x200   : > { %1671 = vadd.xlane.f32.xlu0 %v1670_v19  ;;  %v610_v59 = vpop.permute.xlu0 %609  ;;  %v2043_v36 = vpack.c.bf16 %v1985_v18, %v1984_v56  ;;  %v1625_v47 = vadd.f32 %v1421_v9, %v1420_v37 }
 0x201   : > { %v1456_v2 = vmax.f32 %v1230_v55, 0.0  ;;  %v1457_v50 = vmax.f32 %v1232_v58, 0.0  ;;  %v1226_v52 = vadd.f32 %v3649_v1, %v610_v59  ;;  %v1228_v39 = vadd.f32 %v3651_v44, %v610_v59 }
 0x202   : > { %2818 = vmatpush3.bf16.msra.mxu1 %v2043_v36  ;;  %v535_v40 = vpop.permute.xlu1 %534  ;;  %v1622_v14 = vadd.f32 %v1419_v21, %v1418_v54 }
 0x203   : > { %v1454_v51 = vmax.f32 %v1226_v52, 0.0  ;;  %v1455_v34 = vmax.f32 %v1228_v39, 0.0  ;;  %v1150_v42 = vadd.f32 %v3593_v61, %v535_v40  ;;  %v1152_v45 = vadd.f32 %v3595_v62, %v535_v40 }
 0x204   : > { %1623 = vadd.xlane.f32.xlu0 %v1622_v14  ;;  %v530_v48 = vpop.permute.xlu0 %529  ;;  %v1679_v53 = vadd.f32 %v1457_v50, %v1456_v2 }
 0x205   : > { %v1424_v31 = vmax.f32 %v1150_v42, 0.0  ;;  %v1425_v43 = vmax.f32 %v1152_v45, 0.0  ;;  %v1146_v26 = vadd.f32 %v3589_v57, %v530_v48  ;;  %v1148_v1 = vadd.f32 %v3591_v60, %v530_v48 }
 0x206   : > { %v705_v11 = vpop.permute.xlu1 %704  ;;  %v1676_v44 = vadd.f32 %v1455_v34, %v1454_v51 }
 0x207   : > { %v1422_v37 = vmax.f32 %v1146_v26, 0.0  ;;  %v1423_v9 = vmax.f32 %v1148_v1, 0.0  ;;  %v1320_v41 = vadd.f32 %v3676_v12, %v705_v11  ;;  %v1322_v23 = vadd.f32 %v3682_v0, %v705_v11 }
 0x208   : > { %1626 = vadd.xlane.f32.xlu0 %v1625_v47  ;;  %1677 = vadd.xlane.f32.xlu1 %v1676_v44  ;;  %v700_v61 = vpop.permute.xlu0 %699  ;;  %v1631_v62 = vadd.f32 %v1425_v43, %v1424_v31 }
 0x209   : > { %v1492_v5 = vmax.f32 %v1320_v41, 0.0  ;;  %v1493_v19 = vmax.f32 %v1322_v23, 0.0  ;;  %v1316_v56 = vadd.f32 %v3669_v6, %v700_v61  ;;  %v1318_v57 = vadd.f32 %v3671_v10, %v700_v61 }
 0x20a   : > { %v625_v18 = vpop.permute.xlu1 %624  ;;  %v1628_v60 = vadd.f32 %v1423_v9, %v1422_v37 }
 0x20b   : > { %v1490_v54 = vmax.f32 %v1316_v56, 0.0  ;;  %v1491_v21 = vmax.f32 %v1318_v57, 0.0  ;;  %v1240_v55 = vadd.f32 %v3692_v20, %v625_v18  ;;  %v1242_v12 = vadd.f32 %v3697_v22, %v625_v18 }
 0x20c   : > { %1680 = vadd.xlane.f32.xlu0 %v1679_v53  ;;  %1629 = vadd.xlane.f32.xlu1 %v1628_v60  ;;  %v620_v0 = vpop.permute.xlu0 %619  ;;  %v1733_v58 = vadd.f32 %v1493_v19, %v1492_v5 }
 0x20d   : > { %v1460_v59 = vmax.f32 %v1240_v55, 0.0  ;;  %v1461_v36 = vmax.f32 %v1242_v12, 0.0  ;;  %v1236_v47 = vadd.f32 %v3684_v15, %v620_v0  ;;  %v1238_v6 = vadd.f32 %v3687_v16, %v620_v0 }
 0x20e   : > { %v715_v2 = vpop.permute.xlu1 %714  ;;  %v1730_v10 = vadd.f32 %v1491_v21, %v1490_v54 }
 0x20f   : > { %v1458_v50 = vmax.f32 %v1236_v47, 0.0  ;;  %v1459_v52 = vmax.f32 %v1238_v6, 0.0  ;;  %v1330_v39 = vadd.f32 %v3706_v29, %v715_v2  ;;  %v1332_v20 = vadd.f32 %v3712_v32, %v715_v2  ;;  %v4437_v2 = vld [vmem:[#allocation3_spill] sm:$0xff] }
 0x210   : > { %1632 = vadd.xlane.f32.xlu0 %v1631_v62  ;;  %1731 = vadd.xlane.f32.xlu1 %v1730_v10  ;;  %v710_v22 = vpop.permute.xlu0 %709  ;;  %v1685_v40 = vadd.f32 %v1461_v36, %v1460_v59 }
 0x211   : > { %v1496_v14 = vmax.f32 %v1330_v39, 0.0  ;;  %v1497_v51 = vmax.f32 %v1332_v20, 0.0  ;;  %v1326_v34 = vadd.f32 %v3699_v24, %v710_v22  ;;  %v1328_v15 = vadd.f32 %v3701_v27, %v710_v22  ;;  %v4438_v39 = vld [vmem:[#allocation6_spill] sm:$0xff]  ;;  %v4439_v22 = vld [vmem:[#allocation7_spill] sm:$0xff] }
 0x212   : > { %v635_v42 = vpop.permute.xlu1 %634  ;;  %v1682_v16 = vadd.f32 %v1459_v52, %v1458_v50 }
 0x213   : > { %v1494_v45 = vmax.f32 %v1326_v34, 0.0  ;;  %v1495_v48 = vmax.f32 %v1328_v15, 0.0  ;;  %v1250_v53 = vadd.f32 %v3722_v38, %v635_v42  ;;  %v1252_v29 = vadd.f32 %v3727_v63, %v635_v42  ;;  %v4440_v34 = vld [vmem:[#allocation4_spill] sm:$0xff]  ;;  %v4441_v42 = vld [vmem:[#allocation5_spill] sm:$0xff] }
 0x214   : > { %1734 = vadd.xlane.f32.xlu0 %v1733_v58  ;;  %1683 = vadd.xlane.f32.xlu1 %v1682_v16  ;;  %v630_v32 = vpop.permute.xlu0 %629  ;;  %v1739_v31 = vadd.f32 %v1497_v51, %v1496_v14 }
 0x215   : > { %v1464_v43 = vmax.f32 %v1250_v53, 0.0  ;;  %v1465_v26 = vmax.f32 %v1252_v29, 0.0  ;;  %v1246_v1 = vadd.f32 %v3714_v33, %v630_v32  ;;  %v1248_v24 = vadd.f32 %v3717_v35, %v630_v32  ;;  %v4442_v29 = vld [vmem:[#allocation10_spill] sm:$0xff] }
 0x216   : > { %v725_v11 = vpop.permute.xlu1 %724  ;;  %v1736_v27 = vadd.f32 %v1495_v48, %v1494_v45 }
 0x217   : > { %v1462_v44 = vmax.f32 %v1246_v1, 0.0  ;;  %v1463_v37 = vmax.f32 %v1248_v24, 0.0  ;;  %v1340_v9 = vadd.f32 %v3736_v46, %v725_v11  ;;  %v1342_v38 = vadd.f32 %v3742_v3, %v725_v11 }
 0x218   : > { %1686 = vadd.xlane.f32.xlu0 %v1685_v40  ;;  %1737 = vadd.xlane.f32.xlu1 %v1736_v27  ;;  %v720_v63 = vpop.permute.xlu0 %719  ;;  %v1691_v41 = vadd.f32 %v1465_v26, %v1464_v43  ;;  %v4444_v27 = vld [vmem:[#allocation8_spill] sm:$0xff] }
 0x219   : > { %v1500_v23 = vmax.f32 %v1340_v9, 0.0  ;;  %v1501_v61 = vmax.f32 %v1342_v38, 0.0  ;;  %v1336_v62 = vadd.f32 %v3729_v17, %v720_v63  ;;  %v1338_v33 = vadd.f32 %v3731_v49, %v720_v63 }
 0x21a   : > { %v645_v5 = vpop.permute.xlu1 %644  ;;  %v1688_v35 = vadd.f32 %v1463_v37, %v1462_v44  ;;  %v4445_v37 = vld [vmem:[#allocation9_spill] sm:$0xff] }
 0x21b   : > { %v1498_v19 = vmax.f32 %v1336_v62, 0.0  ;;  %v1499_v56 = vmax.f32 %v1338_v33, 0.0  ;;  %v1260_v57 = vadd.f32 %v3752_v8, %v645_v5  ;;  %v1262_v46 = vadd.f32 %v3757_v13, %v645_v5  ;;  %v4447_v33 = vld [vmem:[#allocation15_spill] sm:$0xff] }
 0x21c   : > { %1740 = vadd.xlane.f32.xlu0 %v1739_v31  ;;  %1689 = vadd.xlane.f32.xlu1 %v1688_v35  ;;  %v640_v3 = vpop.permute.xlu0 %639  ;;  %v1745_v18 = vadd.f32 %v1501_v61, %v1500_v23  ;;  %v4443_v31 = vld [vmem:[#allocation11_spill] sm:$0xff]  ;;  %v4446_v61 = vld [vmem:[#allocation14_spill] sm:$0xff] }
 0x21d   : > { %v1468_v60 = vmax.f32 %v1260_v57, 0.0  ;;  %v1469_v54 = vmax.f32 %v1262_v46, 0.0  ;;  %v1256_v21 = vadd.f32 %v3744_v7, %v640_v3  ;;  %v1258_v17 = vadd.f32 %v3747_v4, %v640_v3  ;;  %v4448_v3 = vld [vmem:[#allocation12_spill] sm:$0xff] }
 0x21e   : > { %v735_v55 = vpop.permute.xlu1 %734  ;;  %v1742_v49 = vadd.f32 %v1499_v56, %v1498_v19  ;;  %v3000_v56 = vld [vmem:[%s4397_s3 + $0x4] ss:$16 sps:$4 sm:$0xff]  }
 0x21f   : > { %v1466_v12 = vmax.f32 %v1256_v21, 0.0  ;;  %v1467_v0 = vmax.f32 %v1258_v17, 0.0  ;;  %v1350_v58 = vadd.f32 %v3766_v30, %v735_v55  ;;  %v1352_v8 = vadd.f32 %v3772_v28, %v735_v55  ;;  %2310 = vmatprep.mubr.bf16.mxu1 %v3000_v56 }
 0x220   : > { %1692 = vadd.xlane.f32.xlu0 %v1691_v41  ;;  %1743 = vadd.xlane.f32.xlu1 %v1742_v49  ;;  %v730_v13 = vpop.permute.xlu0 %729  ;;  %v1697_v59 = vadd.f32 %v1469_v54, %v1468_v60  ;;  %v4449_v60 = vld [vmem:[#allocation13_spill] sm:$0xff] }
 0x221   : > { %v1504_v36 = vmax.f32 %v1350_v58, 0.0  ;;  %v1505_v47 = vmax.f32 %v1352_v8, 0.0  ;;  %v1346_v6 = vadd.f32 %v3759_v25, %v730_v13  ;;  %v1348_v7 = vadd.f32 %v4437_v2, %v730_v13  ;;  %v4451_v58 = vld [vmem:[#allocation19_spill] sm:$0xff] }
 0x222   : > { %v655_v10 = vpop.permute.xlu1 %654  ;;  %v1694_v4 = vadd.f32 %v1467_v0, %v1466_v12  ;;  %v4450_v12 = vld [vmem:[#allocation18_spill] sm:$0xff] }
 0x223   : > { %v1502_v50 = vmax.f32 %v1346_v6, 0.0  ;;  %v1503_v52 = vmax.f32 %v1348_v7, 0.0  ;;  %v1270_v20 = vadd.f32 %v4438_v39, %v655_v10  ;;  %v1272_v30 = vadd.f32 %v4439_v22, %v655_v10  ;;  %v4452_v6 = vld [vmem:[#allocation16_spill] sm:$0xff]  ;;  %v4453_v7 = vld [vmem:[#allocation17_spill] sm:$0xff] }
 0x224   : > { %1746 = vadd.xlane.f32.xlu0 %v1745_v18  ;;  %1695 = vadd.xlane.f32.xlu1 %v1694_v4  ;;  %v650_v28 = vpop.permute.xlu0 %649  ;;  %v1751_v40 = vadd.f32 %v1505_v47, %v1504_v36 }
 0x225   : > { %v1472_v14 = vmax.f32 %v1270_v20, 0.0  ;;  %v1473_v51 = vmax.f32 %v1272_v30, 0.0  ;;  %v1266_v15 = vadd.f32 %v4440_v34, %v650_v28  ;;  %v1268_v25 = vadd.f32 %v4441_v42, %v650_v28  ;;  %v4454_v20 = vld [vmem:[#allocation22_spill] sm:$0xff]  ;;  %v4455_v30 = vld [vmem:[#allocation23_spill] sm:$0xff] }
 0x226   : > { %v745_v16 = vpop.permute.xlu1 %744  ;;  %v1748_v45 = vadd.f32 %v1503_v52, %v1502_v50 }
 0x227   : > { %v1470_v48 = vmax.f32 %v1266_v15, 0.0  ;;  %v1471_v53 = vmax.f32 %v1268_v25, 0.0  ;;  %v1360_v32 = vadd.f32 %v4442_v29, %v745_v16  ;;  %v1362_v43 = vadd.f32 %v4443_v31, %v745_v16  ;;  %v4456_v15 = vld [vmem:[#allocation20_spill] sm:$0xff]  ;;  %v4457_v25 = vld [vmem:[#allocation21_spill] sm:$0xff] }
 0x228   : > { %1698 = vadd.xlane.f32.xlu0 %v1697_v59  ;;  %1749 = vadd.xlane.f32.xlu1 %v1748_v45  ;;  %v740_v26 = vpop.permute.xlu0 %739  ;;  %v1703_v1 = vadd.f32 %v1473_v51, %v1472_v14 }
 0x229   : > { %v1508_v24 = vmax.f32 %v1360_v32, 0.0  ;;  %v1509_v11 = vmax.f32 %v1362_v43, 0.0  ;;  %v1356_v44 = vadd.f32 %v4444_v27, %v740_v26  ;;  %v1358_v9 = vadd.f32 %v4445_v37, %v740_v26  ;;  %v4458_v32 = vld [vmem:[#allocation26_spill] sm:$0xff]  ;;  %v4459_v43 = vld [vmem:[#allocation27_spill] sm:$0xff] }
 0x22a   : > { %v665_v38 = vpop.permute.xlu1 %664  ;;  %v1700_v63 = vadd.f32 %v1471_v53, %v1470_v48 }
 0x22b   : > { %v1506_v41 = vmax.f32 %v1356_v44, 0.0  ;;  %v1507_v23 = vmax.f32 %v1358_v9, 0.0  ;;  %v1280_v62 = vadd.f32 %v4446_v61, %v665_v38  ;;  %v1282_v5 = vadd.f32 %v4447_v33, %v665_v38  ;;  %v4460_v44 = vld [vmem:[#allocation24_spill] sm:$0xff]  ;;  %v4461_v9 = vld [vmem:[#allocation25_spill] sm:$0xff] }
 0x22c   : > { %1752 = vadd.xlane.f32.xlu0 %v1751_v40  ;;  %1701 = vadd.xlane.f32.xlu1 %v1700_v63  ;;  %v660_v35 = vpop.permute.xlu0 %659  ;;  %v1757_v19 = vadd.f32 %v1509_v11, %v1508_v24 }
 0x22d   : > { %v1476_v57 = vmax.f32 %v1280_v62, 0.0  ;;  %v1477_v46 = vmax.f32 %v1282_v5, 0.0  ;;  %v1276_v18 = vadd.f32 %v4448_v3, %v660_v35  ;;  %v1278_v54 = vadd.f32 %v4449_v60, %v660_v35  ;;  %v4462_v62 = vld [vmem:[#allocation30_spill] sm:$0xff]  ;;  %v4463_v5 = vld [vmem:[#allocation31_spill] sm:$0xff]  ;;  %v4464_v3 = vld [vmem:[#allocation28_spill] sm:$0xff] }
 0x22e   : > { %v755_v21 = vpop.permute.xlu1 %754  ;;  %v1754_v17 = vadd.f32 %v1507_v23, %v1506_v41  ;;  %v4465_v60 = vld [vmem:[#allocation29_spill] sm:$0xff] }
 0x22f   : > { %v1474_v55 = vmax.f32 %v1276_v18, 0.0  ;;  %v1475_v49 = vmax.f32 %v1278_v54, 0.0  ;;  %v1370_v0 = vadd.f32 %v4450_v12, %v755_v21  ;;  %v1372_v8 = vadd.f32 %v4451_v58, %v755_v21  ;;  %v4466_v12 = vld [vmem:[#allocation34_spill] sm:$0xff]  ;;  %v4467_v58 = vld [vmem:[#allocation35_spill] sm:$0xff] }
 0x230   : > { %1704 = vadd.xlane.f32.xlu0 %v1703_v1  ;;  %1755 = vadd.xlane.f32.xlu1 %v1754_v17  ;;  %v750_v13 = vpop.permute.xlu0 %749  ;;  %v1709_v59 = vadd.f32 %v1477_v46, %v1476_v57 }
 0x231   : > { %v1512_v36 = vmax.f32 %v1370_v0, 0.0  ;;  %v1513_v47 = vmax.f32 %v1372_v8, 0.0  ;;  %v1366_v2 = vadd.f32 %v4452_v6, %v750_v13  ;;  %v1368_v10 = vadd.f32 %v4453_v7, %v750_v13  ;;  %v4468_v6 = vld [vmem:[#allocation32_spill] sm:$0xff]  ;;  %v4469_v7 = vld [vmem:[#allocation33_spill] sm:$0xff] }
 0x232   : > { %v675_v4 = vpop.permute.xlu1 %674  ;;  %v1706_v50 = vadd.f32 %v1475_v49, %v1474_v55 }
 0x233   : > { %v1510_v52 = vmax.f32 %v1366_v2, 0.0  ;;  %v1511_v39 = vmax.f32 %v1368_v10, 0.0  ;;  %v1290_v22 = vadd.f32 %v4454_v20, %v675_v4  ;;  %v1292_v28 = vadd.f32 %v4455_v30, %v675_v4  ;;  %v4470_v20 = vld [vmem:[#allocation38_spill] sm:$0xff]  ;;  %v4471_v30 = vld [vmem:[#allocation39_spill] sm:$0xff] }
 0x234   : > { %1758 = vadd.xlane.f32.xlu0 %v1757_v19  ;;  %1707 = vadd.xlane.f32.xlu1 %v1706_v50  ;;  %v670_v40 = vpop.permute.xlu0 %669  ;;  %v1763_v14 = vadd.f32 %v1513_v47, %v1512_v36 }
 0x235   : > { %v1480_v51 = vmax.f32 %v1290_v22, 0.0  ;;  %v1481_v34 = vmax.f32 %v1292_v28, 0.0  ;;  %v1286_v42 = vadd.f32 %v4456_v15, %v670_v40  ;;  %v1288_v16 = vadd.f32 %v4457_v25, %v670_v40  ;;  %v4472_v15 = vld [vmem:[#allocation36_spill] sm:$0xff]  ;;  %v4473_v25 = vld [vmem:[#allocation37_spill] sm:$0xff] }
 0x236   : > { %v765_v45 = vpop.permute.xlu1 %764  ;;  %v1760_v48 = vadd.f32 %v1511_v39, %v1510_v52 }
 0x237   : > { %v1478_v53 = vmax.f32 %v1286_v42, 0.0  ;;  %v1479_v29 = vmax.f32 %v1288_v16, 0.0  ;;  %v1380_v31 = vadd.f32 %v4458_v32, %v765_v45  ;;  %v1382_v26 = vadd.f32 %v4459_v43, %v765_v45 }
 0x238   : > { %1710 = vadd.xlane.f32.xlu0 %v1709_v59  ;;  %1761 = vadd.xlane.f32.xlu1 %v1760_v48  ;;  %v760_v1 = vpop.permute.xlu0 %759  ;;  %v1715_v24 = vadd.f32 %v1481_v34, %v1480_v51 }
 0x239   : > { %v1516_v11 = vmax.f32 %v1380_v31, 0.0  ;;  %v1517_v27 = vmax.f32 %v1382_v26, 0.0  ;;  %v1376_v37 = vadd.f32 %v4460_v44, %v760_v1  ;;  %v1378_v38 = vadd.f32 %v4461_v9, %v760_v1  ;;  %v1551_v31 = vld [vmem:[#allocation2 + $0xe8] sm:$0xff]  ;;  %v1550_v26 = vld [vmem:[#allocation2 + $0xe0] sm:$0xff]  ;;  %v1552_v9 = vld [vmem:[#allocation2 + $0xf0] sm:$0xff] }
 0x23a   : > { %v685_v63 = vpop.permute.xlu1 %684  ;;  %v1712_v41 = vadd.f32 %v1479_v29, %v1478_v53 }
 0x23b   : > { %v1514_v23 = vmax.f32 %v1376_v37, 0.0  ;;  %v1515_v61 = vmax.f32 %v1378_v38, 0.0  ;;  %v1300_v33 = vadd.f32 %v4462_v62, %v685_v63  ;;  %v1302_v35 = vadd.f32 %v4463_v5, %v685_v63  ;;  %v1535_v38 = vld [vmem:[#allocation2 + $0x68] sm:$0xff]  ;;  %v1553_v5 = vld [vmem:[#allocation2 + $0xf8] sm:$0xff] }
 0x23c   : > { %1764 = vadd.xlane.f32.xlu0 %v1763_v14  ;;  %1713 = vadd.xlane.f32.xlu1 %v1712_v41  ;;  %v680_v19 = vpop.permute.xlu0 %679  ;;  %v1769_v56 = vadd.f32 %v1517_v27, %v1516_v11  ;;  %v1534_v27 = vld [vmem:[#allocation2 + $0x60] sm:$0xff] }
 0x23d   : > { %v1484_v57 = vmax.f32 %v1300_v33, 0.0  ;;  %v1485_v46 = vmax.f32 %v1302_v35, 0.0  ;;  %v1296_v18 = vadd.f32 %v4464_v3, %v680_v19  ;;  %v1298_v54 = vadd.f32 %v4465_v60, %v680_v19  ;;  %v1536_v33 = vld [vmem:[#allocation2 + $0x70] sm:$0xff] }
 0x23e   : > { %v775_v21 = vpop.permute.xlu1 %774  ;;  %v1766_v17 = vadd.f32 %v1515_v61, %v1514_v23 }
 0x23f   : > { %v1482_v55 = vmax.f32 %v1296_v18, 0.0  ;;  %v1483_v49 = vmax.f32 %v1298_v54, 0.0  ;;  %v1390_v0 = vadd.f32 %v4466_v12, %v775_v21  ;;  %v1392_v8 = vadd.f32 %v4467_v58, %v775_v21  ;;  %v1570_v54 = vld [vmem:[#allocation2 + $0x180] sm:$0xff]  ;;  %v1537_v21 = vld [vmem:[#allocation2 + $0x78] sm:$0xff] }
 0x240   : > { %1716 = vadd.xlane.f32.xlu0 %v1715_v24  ;;  %1767 = vadd.xlane.f32.xlu1 %v1766_v17  ;;  %v770_v13 = vpop.permute.xlu0 %769  ;;  %v1721_v59 = vadd.f32 %v1485_v46, %v1484_v57  ;;  %v1554_v58 = vld [vmem:[#allocation2 + $0x100] sm:$0xff] }
 0x241   : > { %v1520_v36 = vmax.f32 %v1390_v0, 0.0  ;;  %v1521_v47 = vmax.f32 %v1392_v8, 0.0  ;;  %v1386_v2 = vadd.f32 %v4468_v6, %v770_v13  ;;  %v1388_v10 = vadd.f32 %v4469_v7, %v770_v13  ;;  %v1571_v8 = vld [vmem:[#allocation2 + $0x188] sm:$0xff] }
 0x242   : > { %v695_v4 = vpop.permute.xlu1 %694  ;;  %v1718_v50 = vadd.f32 %v1483_v49, %v1482_v55 }
 0x243   : > { %v1518_v52 = vmax.f32 %v1386_v2, 0.0  ;;  %v1519_v39 = vmax.f32 %v1388_v10, 0.0  ;;  %v1310_v22 = vadd.f32 %v4470_v20, %v695_v4  ;;  %v1312_v28 = vadd.f32 %v4471_v30, %v695_v4 }
 0x244   : > { %1770 = vadd.xlane.f32.xlu0 %v1769_v56  ;;  %1719 = vadd.xlane.f32.xlu1 %v1718_v50  ;;  %v690_v40 = vpop.permute.xlu0 %689  ;;  %v1775_v14 = vadd.f32 %v1521_v47, %v1520_v36  ;;  %v1572_v50 = vld [vmem:[#allocation2 + $0x190] sm:$0xff] }
 0x245   : > { %v1488_v51 = vmax.f32 %v1310_v22, 0.0  ;;  %v1489_v34 = vmax.f32 %v1312_v28, 0.0  ;;  %v1306_v42 = vadd.f32 %v4472_v15, %v690_v40  ;;  %v1308_v16 = vadd.f32 %v4473_v25, %v690_v40  ;;  %v1556_v15 = vld [vmem:[#allocation2 + $0x110] sm:$0xff] }
 0x246   : > { %v1772_v45 = vadd.f32 %v1519_v39, %v1518_v52  ;;  %v1555_v52 = vld [vmem:[#allocation2 + $0x108] sm:$0xff] }
 0x247   : > { %v1486_v48 = vmax.f32 %v1306_v42, 0.0  ;;  %v1487_v53 = vmax.f32 %v1308_v16, 0.0  ;;  %v1727_v29 = vadd.f32 %v1489_v34, %v1488_v51  ;;  %v1573_v42 = vld [vmem:[#allocation2 + $0x198] sm:$0xff] }
 0x248   : > { %1722 = vadd.xlane.f32.xlu0 %v1721_v59  ;;  %1773 = vadd.xlane.f32.xlu1 %v1772_v45 }
 0x249   : > { %v1724_v32 = vadd.f32 %v1487_v53, %v1486_v48 }
 0x24c   : > { %1776 = vadd.xlane.f32.xlu0 %v1775_v14  ;;  %1725 = vadd.xlane.f32.xlu1 %v1724_v32 }
 0x250   : > { %1728 = vadd.xlane.f32.xlu0 %v1727_v29 }
 0x28b   : > { %v1675_v43 = vpop.xlane.xlu1 %1674 }
 0x28c   : > { %v1807_v1 = vadd.f32 %v1675_v43, %v1551_v31 }
 0x28d   : > { %v1672_v24 = vpop.xlane.xlu0 %1671 }
 0x28e   : > { %1872 = vst.msk [vmem:[#allocation2 + $0xe8] sm:$0xff] %vm258_vm2, %v1807_v1  ;;  %v1806_v11 = vadd.f32 %v1672_v24, %v1550_v26  ;;  %v1574_v26 = vld [vmem:[#allocation2 + $0x1a0] sm:$0xff]  ;;  %v1557_v1 = vld [vmem:[#allocation2 + $0x118] sm:$0xff] }
 0x28f   : > { %v2998_v24 = vld [vmem:[%s4397_s3] ss:$16 sps:$4 sm:$0xff]  }
 0x290   : > { %1871 = vst.msk [vmem:[#allocation2 + $0xe0] sm:$0xff] %vm258_vm2, %v1806_v11 }
 0x291   : > { %v1624_v44 = vpop.xlane.xlu0 %1623 }
 0x292   : > { %v1790_v37 = vadd.f32 %v1624_v44, %v1534_v27 }
 0x294   : > { %1855 = vst.msk [vmem:[#allocation2 + $0x60] sm:$0xff] %vm258_vm2, %v1790_v37  ;;  %v3001_v37 = vld [vmem:[%s4397_s3 + $0x24] ss:$16 sps:$4 sm:$0xff]  }
 0x295   : > { %v1678_v63 = vpop.xlane.xlu1 %1677  ;;  %v1627_v41 = vpop.xlane.xlu0 %1626  ;;  %v1939_v23 = vld [vmem:[#allocation2 + $0xe8] sm:$0xff] }
 0x296   : > { %v1808_v61 = vadd.f32 %v1678_v63, %v1552_v9  ;;  %v1791_v62 = vadd.f32 %v1627_v41, %v1535_v38  ;;  %v2003_v56 = vmul.f32 0.00390625, %v1939_v23 }
 0x297   : > { %v1938_v35 = vld [vmem:[#allocation2 + $0xe0] sm:$0xff] }
 0x298   : > { %1873 = vst.msk [vmem:[#allocation2 + $0xf0] sm:$0xff] %vm258_vm2, %v1808_v61  ;;  %1856 = vst.msk [vmem:[#allocation2 + $0x68] sm:$0xff] %vm258_vm2, %v1791_v62  ;;  %v2002_v19 = vmul.f32 0.00390625, %v1938_v35  ;;  %v1558_v62 = vld [vmem:[#allocation2 + $0x120] sm:$0xff] }
 0x299   : > { %v1630_v57 = vpop.xlane.xlu1 %1629  ;;  %v1681_v46 = vpop.xlane.xlu0 %1680 }
 0x29a   : > { %v1792_v3 = vadd.f32 %v1630_v57, %v1536_v33  ;;  %v1809_v18 = vadd.f32 %v1681_v46, %v1553_v5  ;;  %v2052_v60 = vpack.c.bf16 %v2003_v56, %v2002_v19  ;;  %v1575_v33 = vld [vmem:[#allocation2 + $0x1a8] sm:$0xff] }
 0x29b   : > { %v1922_v49 = vld [vmem:[#allocation2 + $0x60] sm:$0xff] }
 0x29c   : > { %1857 = vst.msk [vmem:[#allocation2 + $0x70] sm:$0xff] %vm258_vm2, %v1792_v3  ;;  %1874 = vst.msk [vmem:[#allocation2 + $0xf8] sm:$0xff] %vm258_vm2, %v1809_v18  ;;  %2819 = vmatprep.subr.bf16.mxu1 %v2052_v60  ;;  %v1986_v59 = vmul.f32 0.00390625, %v1922_v49 }
 0x29d   : > { %v1732_v17 = vpop.xlane.xlu1 %1731  ;;  %v1633_v55 = vpop.xlane.xlu0 %1632 }
 0x29e   : > { %v1826_v12 = vadd.f32 %v1732_v17, %v1570_v54  ;;  %v1793_v0 = vadd.f32 %v1633_v55, %v1537_v21  ;;  %v1576_v54 = vld [vmem:[#allocation2 + $0x1b0] sm:$0xff]  ;;  %v1559_v21 = vld [vmem:[#allocation2 + $0x128] sm:$0xff] }
 0x29f   : > { %v1923_v13 = vld [vmem:[#allocation2 + $0x68] sm:$0xff]  ;;  %v1940_v2 = vld [vmem:[#allocation2 + $0xf0] sm:$0xff] }
 0x2a0   : > { %1891 = vst.msk [vmem:[#allocation2 + $0x180] sm:$0xff] %vm258_vm2, %v1826_v12  ;;  %1858 = vst.msk [vmem:[#allocation2 + $0x78] sm:$0xff] %vm258_vm2, %v1793_v0  ;;  %v1987_v36 = vmul.f32 0.00390625, %v1923_v13  ;;  %v2004_v20 = vmul.f32 0.00390625, %v1940_v2  ;;  %v3003_v17 = vld [vmem:[%s4397_s3 + $0x20] ss:$16 sps:$4 sm:$0xff]  }
 0x2a1   : > { %v1684_v47 = vpop.xlane.xlu1 %1683  ;;  %v1735_v6 = vpop.xlane.xlu0 %1734  ;;  %v3004_v0 = vld [vmem:[%s4397_s3 + $0x44] ss:$16 sps:$4 sm:$0xff]   ;;  %v1577_v2 = vld [vmem:[#allocation2 + $0x1b8] sm:$0xff] }
 0x2a2   : > { %v1810_v7 = vadd.f32 %v1684_v47, %v1554_v58  ;;  %v1827_v10 = vadd.f32 %v1735_v6, %v1571_v8  ;;  %v2044_v4 = vpack.c.bf16 %v1987_v36, %v1986_v59  ;;  %v1560_v6 = vld [vmem:[#allocation2 + $0x130] sm:$0xff] }
 0x2a3   : > { %v1941_v39 = vld [vmem:[#allocation2 + $0xf8] sm:$0xff]  ;;  %v1924_v40 = vld [vmem:[#allocation2 + $0x70] sm:$0xff] }
 0x2a4   : > { %1875 = vst.msk [vmem:[#allocation2 + $0x100] sm:$0xff] %vm258_vm2, %v1810_v7  ;;  %1892 = vst.msk [vmem:[#allocation2 + $0x188] sm:$0xff] %vm258_vm2, %v1827_v10  ;;  %2820 = vmatpush3.bf16.msra.mxu1 %v2044_v4  ;;  %v2005_v22 = vmul.f32 0.00390625, %v1941_v39  ;;  %v1988_v16 = vmul.f32 0.00390625, %v1924_v40  ;;  %v1561_v40 = vld [vmem:[#allocation2 + $0x138] sm:$0xff] }
 0x2a5   : > { %v1738_v30 = vpop.xlane.xlu1 %1737  ;;  %v1687_v28 = vpop.xlane.xlu0 %1686 }
 0x2a6   : > { %v1828_v14 = vadd.f32 %v1738_v30, %v1572_v50  ;;  %v1811_v51 = vadd.f32 %v1687_v28, %v1555_v52  ;;  %v2053_v34 = vpack.c.bf16 %v2005_v22, %v2004_v20  ;;  %v1578_v28 = vld [vmem:[#allocation2 + $0x1c0] sm:$0xff] }
 0x2a7   : > { %v1925_v25 = vld [vmem:[#allocation2 + $0x78] sm:$0xff]  ;;  %v1958_v29 = vld [vmem:[#allocation2 + $0x180] sm:$0xff] }
 0x2a8   : > { %1893 = vst.msk [vmem:[#allocation2 + $0x190] sm:$0xff] %vm258_vm2, %v1828_v14  ;;  %1876 = vst.msk [vmem:[#allocation2 + $0x108] sm:$0xff] %vm258_vm2, %v1811_v51  ;;  %2821 = vmatprep.subr.bf16.mxu1 %v2053_v34  ;;  %v1989_v45 = vmul.f32 0.00390625, %v1925_v25  ;;  %v2022_v27 = vmul.f32 0.00390625, %v1958_v29  ;;  %v3006_v14 = vld [vmem:[%s4397_s3 + $0x40] ss:$16 sps:$4 sm:$0xff]  }
 0x2a9   : > { %v1690_v48 = vpop.xlane.xlu1 %1689  ;;  %v1741_v53 = vpop.xlane.xlu0 %1740 }
 0x2aa   : > { %v1812_v32 = vadd.f32 %v1690_v48, %v1556_v15  ;;  %v1829_v31 = vadd.f32 %v1741_v53, %v1573_v42  ;;  %v2045_v43 = vpack.c.bf16 %v1989_v45, %v1988_v16  ;;  %v3007_v42 = vld [vmem:[%s4397_s3 + $0x64] ss:$16 sps:$4 sm:$0xff]  }
 0x2ab   : > { %v1959_v11 = vld [vmem:[#allocation2 + $0x188] sm:$0xff]  ;;  %v1942_v63 = vld [vmem:[#allocation2 + $0x100] sm:$0xff] }
 0x2ac   : > { %1877 = vst.msk [vmem:[#allocation2 + $0x110] sm:$0xff] %vm258_vm2, %v1812_v32  ;;  %1894 = vst.msk [vmem:[#allocation2 + $0x198] sm:$0xff] %vm258_vm2, %v1829_v31  ;;  %2822 = vmatpush3.bf16.msra.mxu1 %v2045_v43  ;;  %v2023_v44 = vmul.f32 0.00390625, %v1959_v11  ;;  %v2006_v35 = vmul.f32 0.00390625, %v1942_v63  ;;  %v1562_v32 = vld [vmem:[#allocation2 + $0x140] sm:$0xff]  ;;  %v1579_v31 = vld [vmem:[#allocation2 + $0x1c8] sm:$0xff] }
 0x2ad   : > { %v1744_v9 = vpop.xlane.xlu1 %1743  ;;  %v1693_v38 = vpop.xlane.xlu0 %1692  ;;  %v1563_v63 = vld [vmem:[#allocation2 + $0x148] sm:$0xff] }
 0x2ae   : > { %v1830_v41 = vadd.f32 %v1744_v9, %v1574_v26  ;;  %v1813_v23 = vadd.f32 %v1693_v38, %v1557_v1  ;;  %v2062_v61 = vpack.c.bf16 %v2023_v44, %v2022_v27  ;;  %v1580_v38 = vld [vmem:[#allocation2 + $0x1d0] sm:$0xff] }
 0x2af   : > { %2311 = vmatmul.mubr.bf16.vlgmr.msra.gmra.mrb[32].mxu1 %v2998_v24  ;;  %v1943_v5 = vld [vmem:[#allocation2 + $0x108] sm:$0xff]  ;;  %v1960_v46 = vld [vmem:[#allocation2 + $0x190] sm:$0xff] }
 0x2b0   : > { %1895 = vst.msk [vmem:[#allocation2 + $0x1a0] sm:$0xff] %vm258_vm2, %v1830_v41  ;;  %1878 = vst.msk [vmem:[#allocation2 + $0x118] sm:$0xff] %vm258_vm2, %v1813_v23  ;;  %2871 = vmatprep.subr.bf16.mxu1 %v2062_v61  ;;  %v2007_v19 = vmul.f32 0.00390625, %v1943_v5  ;;  %2318 = vmatprep.mubr.bf16.mxu1 %v3001_v37  ;;  %v2024_v49 = vmul.f32 0.00390625, %v1960_v46  ;;  %v3009_v41 = vld [vmem:[%s4397_s3 + $0x60] ss:$16 sps:$4 sm:$0xff]  }
 0x2b1   : > { %v1696_v56 = vpop.xlane.xlu1 %1695  ;;  %v1747_v57 = vpop.xlane.xlu0 %1746 }
 0x2b2   : > { %v1814_v3 = vadd.f32 %v1696_v56, %v1558_v62  ;;  %v1831_v18 = vadd.f32 %v1747_v57, %v1575_v33  ;;  %v2054_v60 = vpack.c.bf16 %v2007_v19, %v2006_v35  ;;  %v3010_v33 = vld [vmem:[%s4397_s3 + $0x84] ss:$16 sps:$4 sm:$0xff]  }
 0x2b3   : > { %v1961_v55 = vld [vmem:[#allocation2 + $0x198] sm:$0xff]  ;;  %v1944_v13 = vld [vmem:[#allocation2 + $0x110] sm:$0xff] }
 0x2b4   : > { %1879 = vst.msk [vmem:[#allocation2 + $0x120] sm:$0xff] %vm258_vm2, %v1814_v3  ;;  %1896 = vst.msk [vmem:[#allocation2 + $0x1a8] sm:$0xff] %vm258_vm2, %v1831_v18  ;;  %2872 = vmatpush3.bf16.msra.mxu1 %v2054_v60  ;;  %v2025_v12 = vmul.f32 0.00390625, %v1961_v55  ;;  %v2008_v10 = vmul.f32 0.00390625, %v1944_v13  ;;  %v1564_v3 = vld [vmem:[#allocation2 + $0x150] sm:$0xff]  ;;  %v1581_v18 = vld [vmem:[#allocation2 + $0x1d8] sm:$0xff] }
 0x2b5   : > { %v1750_v58 = vpop.xlane.xlu1 %1749  ;;  %v1699_v8 = vpop.xlane.xlu0 %1698  ;;  %v1565_v13 = vld [vmem:[#allocation2 + $0x158] sm:$0xff] }
 0x2b6   : > { %v1832_v59 = vadd.f32 %v1750_v58, %v1576_v54  ;;  %v1815_v36 = vadd.f32 %v1699_v8, %v1559_v21  ;;  %v2063_v47 = vpack.c.bf16 %v2025_v12, %v2024_v49  ;;  %v1582_v8 = vld [vmem:[#allocation2 + $0x1e0] sm:$0xff] }
 0x2b7   : > { %2319 = vmatmul.mubr.bf16.gmra.mrb[36].mxu1 %v3003_v17  ;;  %v1945_v7 = vld [vmem:[#allocation2 + $0x118] sm:$0xff]  ;;  %v1962_v39 = vld [vmem:[#allocation2 + $0x1a0] sm:$0xff] }
 0x2b8   : > { %1897 = vst.msk [vmem:[#allocation2 + $0x1b0] sm:$0xff] %vm258_vm2, %v1832_v59  ;;  %1880 = vst.msk [vmem:[#allocation2 + $0x128] sm:$0xff] %vm258_vm2, %v1815_v36  ;;  %2873 = vmatprep.subr.bf16.mxu1 %v2063_v47  ;;  %v2009_v4 = vmul.f32 0.00390625, %v1945_v7  ;;  %2326 = vmatprep.mubr.bf16.mxu1 %v3004_v0  ;;  %v2026_v34 = vmul.f32 0.00390625, %v1962_v39  ;;  %v3012_v59 = vld [vmem:[%s4397_s3 + $0x80] ss:$16 sps:$4 sm:$0xff]  }
 0x2b9   : > { %v1702_v50 = vpop.xlane.xlu1 %1701  ;;  %v1753_v52 = vpop.xlane.xlu0 %1752 }
 0x2ba   : > { %v1816_v20 = vadd.f32 %v1702_v50, %v1560_v6  ;;  %v1833_v22 = vadd.f32 %v1753_v52, %v1577_v2  ;;  %v2055_v30 = vpack.c.bf16 %v2009_v4, %v2008_v10  ;;  %v3013_v2 = vld [vmem:[%s4397_s3 + $0xa4] ss:$16 sps:$4 sm:$0xff]  }
 0x2bb   : > { %v1963_v51 = vld [vmem:[#allocation2 + $0x1a8] sm:$0xff]  ;;  %v1946_v45 = vld [vmem:[#allocation2 + $0x120] sm:$0xff] }
 0x2bc   : > { %1881 = vst.msk [vmem:[#allocation2 + $0x130] sm:$0xff] %vm258_vm2, %v1816_v20  ;;  %1898 = vst.msk [vmem:[#allocation2 + $0x1b8] sm:$0xff] %vm258_vm2, %v1833_v22  ;;  %2874 = vmatpush3.bf16.msra.mxu1 %v2055_v30  ;;  %v2027_v15 = vmul.f32 0.00390625, %v1963_v51  ;;  %v2010_v26 = vmul.f32 0.00390625, %v1946_v45  ;;  %v1566_v20 = vld [vmem:[#allocation2 + $0x160] sm:$0xff]  ;;  %v1583_v22 = vld [vmem:[#allocation2 + $0x1e8] sm:$0xff] }
 0x2bd   : > { %v1756_v25 = vpop.xlane.xlu1 %1755  ;;  %v1705_v16 = vpop.xlane.xlu0 %1704  ;;  %v1567_v45 = vld [vmem:[#allocation2 + $0x168] sm:$0xff] }
 0x2be   : > { %v1834_v48 = vadd.f32 %v1756_v25, %v1578_v28  ;;  %v1817_v53 = vadd.f32 %v1705_v16, %v1561_v40  ;;  %v2064_v29 = vpack.c.bf16 %v2027_v15, %v2026_v34  ;;  %v1584_v16 = vld [vmem:[#allocation2 + $0x1f0] sm:$0xff] }
 0x2bf   : > { %2327 = vmatmul.mubr.bf16.gmra.mrb[40].mxu1 %v3006_v14  ;;  %v1947_v43 = vld [vmem:[#allocation2 + $0x128] sm:$0xff]  ;;  %v1964_v27 = vld [vmem:[#allocation2 + $0x1b0] sm:$0xff] }
 0x2c0   : > { %1899 = vst.msk [vmem:[#allocation2 + $0x1c0] sm:$0xff] %vm258_vm2, %v1834_v48  ;;  %1882 = vst.msk [vmem:[#allocation2 + $0x138] sm:$0xff] %vm258_vm2, %v1817_v53  ;;  %2875 = vmatprep.subr.bf16.mxu1 %v2064_v29  ;;  %v2011_v1 = vmul.f32 0.00390625, %v1947_v43  ;;  %2334 = vmatprep.mubr.bf16.mxu1 %v3007_v42  ;;  %v2028_v61 = vmul.f32 0.00390625, %v1964_v27  ;;  %v3015_v48 = vld [vmem:[%s4397_s3 + $0xa0] ss:$16 sps:$4 sm:$0xff]  }
 0x2c1   : > { %v1708_v24 = vpop.xlane.xlu1 %1707  ;;  %v1759_v11 = vpop.xlane.xlu0 %1758 }
 0x2c2   : > { %v1818_v44 = vadd.f32 %v1708_v24, %v1562_v32  ;;  %v1835_v37 = vadd.f32 %v1759_v11, %v1579_v31  ;;  %v2056_v9 = vpack.c.bf16 %v2011_v1, %v2010_v26  ;;  %v3016_v31 = vld [vmem:[%s4397_s3 + $0xc4] ss:$16 sps:$4 sm:$0xff]  }
 0x2c3   : > { %v1965_v23 = vld [vmem:[#allocation2 + $0x1b8] sm:$0xff]  ;;  %v1948_v19 = vld [vmem:[#allocation2 + $0x130] sm:$0xff] }
 0x2c4   : > { %1883 = vst.msk [vmem:[#allocation2 + $0x140] sm:$0xff] %vm258_vm2, %v1818_v44  ;;  %1900 = vst.msk [vmem:[#allocation2 + $0x1c8] sm:$0xff] %vm258_vm2, %v1835_v37  ;;  %2876 = vmatpush3.bf16.msra.mxu1 %v2056_v9  ;;  %v2029_v62 = vmul.f32 0.00390625, %v1965_v23  ;;  %v2012_v54 = vmul.f32 0.00390625, %v1948_v19  ;;  %v1568_v44 = vld [vmem:[#allocation2 + $0x170] sm:$0xff]  ;;  %v1585_v37 = vld [vmem:[#allocation2 + $0x1f8] sm:$0xff] }
 0x2c5   : > { %v1762_v5 = vpop.xlane.xlu1 %1761  ;;  %v1711_v35 = vpop.xlane.xlu0 %1710  ;;  %v3018_v19 = vld [vmem:[%s4397_s3 + $0xc0] ss:$16 sps:$4 sm:$0xff]  }
 0x2c6   : > { %v1836_v56 = vadd.f32 %v1762_v5, %v1580_v38  ;;  %v1819_v57 = vadd.f32 %v1711_v35, %v1563_v63  ;;  %v2065_v46 = vpack.c.bf16 %v2029_v62, %v2028_v61  ;;  %v1569_v35 = vld [vmem:[#allocation2 + $0x178] sm:$0xff] }
 0x2c7   : > { %2335 = vmatmul.mubr.bf16.gmra.mrb[44].mxu1 %v3009_v41  ;;  %v1949_v60 = vld [vmem:[#allocation2 + $0x138] sm:$0xff]  ;;  %v1966_v49 = vld [vmem:[#allocation2 + $0x1c0] sm:$0xff] }
 0x2c8   : > { %1901 = vst.msk [vmem:[#allocation2 + $0x1d0] sm:$0xff] %vm258_vm2, %v1836_v56  ;;  %1884 = vst.msk [vmem:[#allocation2 + $0x148] sm:$0xff] %vm258_vm2, %v1819_v57  ;;  %2877 = vmatprep.subr.bf16.mxu1 %v2065_v46  ;;  %v2013_v21 = vmul.f32 0.00390625, %v1949_v60  ;;  %2342 = vmatprep.mubr.bf16.mxu1 %v3010_v33  ;;  %v2030_v47 = vmul.f32 0.00390625, %v1966_v49 }
 0x2c9   : > { %v1714_v17 = vpop.xlane.xlu1 %1713  ;;  %v1765_v55 = vpop.xlane.xlu0 %1764 }
 0x2ca   : > { %v1820_v12 = vadd.f32 %v1714_v17, %v1564_v3  ;;  %v1837_v0 = vadd.f32 %v1765_v55, %v1581_v18  ;;  %v2057_v58 = vpack.c.bf16 %v2013_v21, %v2012_v54  ;;  %v3019_v3 = vld [vmem:[%s4397_s3 + $0xe4] ss:$16 sps:$4 sm:$0xff]  }
 0x2cb   : > { %v1967_v36 = vld [vmem:[#allocation2 + $0x1c8] sm:$0xff]  ;;  %v1950_v4 = vld [vmem:[#allocation2 + $0x140] sm:$0xff] }
 0x2cc   : > { %1885 = vst.msk [vmem:[#allocation2 + $0x150] sm:$0xff] %vm258_vm2, %v1820_v12  ;;  %1902 = vst.msk [vmem:[#allocation2 + $0x1d8] sm:$0xff] %vm258_vm2, %v1837_v0  ;;  %2878 = vmatpush3.bf16.msra.mxu1 %v2057_v58  ;;  %v2031_v6 = vmul.f32 0.00390625, %v1967_v36  ;;  %v2014_v28 = vmul.f32 0.00390625, %v1950_v4  ;;  %v3021_v58 = vld [vmem:[%s4397_s3 + $0xe0] ss:$16 sps:$4 sm:$0xff]  }
 0x2cd   : > { %v1768_v7 = vpop.xlane.xlu1 %1767  ;;  %v1717_v10 = vpop.xlane.xlu0 %1716  ;;  %v3024_v36 = vld [vmem:[%s4397_s3 + $0xc] ss:$16 sps:$4 sm:$0xff]  }
 0x2ce   : > { %v1838_v50 = vadd.f32 %v1768_v7, %v1582_v8  ;;  %v1821_v52 = vadd.f32 %v1717_v10, %v1565_v13  ;;  %v2066_v39 = vpack.c.bf16 %v2031_v6, %v2030_v47 }
 0x2cf   : > { %2343 = vmatmul.mubr.bf16.gmra.mrb[48].mxu1 %v3012_v59  ;;  %v1951_v30 = vld [vmem:[#allocation2 + $0x148] sm:$0xff]  ;;  %v1968_v34 = vld [vmem:[#allocation2 + $0x1d0] sm:$0xff] }
 0x2d0   : > { %1903 = vst.msk [vmem:[#allocation2 + $0x1e0] sm:$0xff] %vm258_vm2, %v1838_v50  ;;  %1886 = vst.msk [vmem:[#allocation2 + $0x158] sm:$0xff] %vm258_vm2, %v1821_v52  ;;  %2879 = vmatprep.subr.bf16.mxu1 %v2066_v39  ;;  %v2015_v40 = vmul.f32 0.00390625, %v1951_v30  ;;  %2350 = vmatprep.mubr.bf16.mxu1 %v3013_v2  ;;  %v2032_v29 = vmul.f32 0.00390625, %v1968_v34  ;;  %v3022_v50 = vld [vmem:[%s4397_s3 + $0x8] ss:$16 sps:$4 sm:$0xff]  }
 0x2d1   : > { %v1720_v14 = vpop.xlane.xlu1 %1719  ;;  %v1771_v51 = vpop.xlane.xlu0 %1770  ;;  %v3025_v52 = vld [vmem:[%s4397_s3 + $0x2c] ss:$16 sps:$4 sm:$0xff]   ;;  %v3027_v39 = vld [vmem:[%s4397_s3 + $0x28] ss:$16 sps:$4 sm:$0xff]  }
 0x2d2   : > { %v1822_v15 = vadd.f32 %v1720_v14, %v1566_v20  ;;  %v1839_v42 = vadd.f32 %v1771_v51, %v1583_v22  ;;  %v2058_v25 = vpack.c.bf16 %v2015_v40, %v2014_v28  ;;  %v3028_v20 = vld [vmem:[%s4397_s3 + $0x4c] ss:$16 sps:$4 sm:$0xff]   ;;  %v3030_v22 = vld [vmem:[%s4397_s3 + $0x48] ss:$16 sps:$4 sm:$0xff]  }
 0x2d3   : > { %v1969_v53 = vld [vmem:[#allocation2 + $0x1d8] sm:$0xff]  ;;  %v1952_v1 = vld [vmem:[#allocation2 + $0x150] sm:$0xff] }
 0x2d4   : > { %1887 = vst.msk [vmem:[#allocation2 + $0x160] sm:$0xff] %vm258_vm2, %v1822_v15  ;;  %1904 = vst.msk [vmem:[#allocation2 + $0x1e8] sm:$0xff] %vm258_vm2, %v1839_v42  ;;  %2880 = vmatpush3.bf16.msra.mxu1 %v2058_v25  ;;  %v2033_v32 = vmul.f32 0.00390625, %v1969_v53  ;;  %v2016_v38 = vmul.f32 0.00390625, %v1952_v1  ;;  %v3031_v30 = vld [vmem:[%s4397_s3 + $0x6c] ss:$16 sps:$4 sm:$0xff]  }
 0x2d5   : > { %v1774_v43 = vpop.xlane.xlu1 %1773  ;;  %v1723_v26 = vpop.xlane.xlu0 %1722  ;;  %v3033_v28 = vld [vmem:[%s4397_s3 + $0x68] ss:$16 sps:$4 sm:$0xff]   ;;  %v3034_v40 = vld [vmem:[%s4397_s3 + $0x8c] ss:$16 sps:$4 sm:$0xff]  }
 0x2d6   : > { %v1840_v24 = vadd.f32 %v1774_v43, %v1584_v16  ;;  %v1823_v11 = vadd.f32 %v1723_v26, %v1567_v45  ;;  %v2067_v27 = vpack.c.bf16 %v2033_v32, %v2032_v29  ;;  %v3036_v14 = vld [vmem:[%s4397_s3 + $0x88] ss:$16 sps:$4 sm:$0xff]   ;;  %v3037_v51 = vld [vmem:[%s4397_s3 + $0xac] ss:$16 sps:$4 sm:$0xff]  }
 0x2d7   : > { %2351 = vmatmul.mubr.bf16.gmra.mrb[52].mxu1 %v3015_v48  ;;  %v1953_v9 = vld [vmem:[#allocation2 + $0x158] sm:$0xff]  ;;  %v1970_v61 = vld [vmem:[#allocation2 + $0x1e0] sm:$0xff] }
 0x2d8   : > { %1905 = vst.msk [vmem:[#allocation2 + $0x1f0] sm:$0xff] %vm258_vm2, %v1840_v24  ;;  %1888 = vst.msk [vmem:[#allocation2 + $0x168] sm:$0xff] %vm258_vm2, %v1823_v11  ;;  %2881 = vmatprep.subr.bf16.mxu1 %v2067_v27  ;;  %v2017_v63 = vmul.f32 0.00390625, %v1953_v9  ;;  %2358 = vmatprep.mubr.bf16.mxu1 %v3016_v31  ;;  %v2034_v57 = vmul.f32 0.00390625, %v1970_v61  ;;  %v3039_v34 = vld [vmem:[%s4397_s3 + $0xa8] ss:$16 sps:$4 sm:$0xff]  }
 0x2d9   : > { %v1726_v41 = vpop.xlane.xlu1 %1725  ;;  %v1777_v23 = vpop.xlane.xlu0 %1776  ;;  %v3040_v15 = vld [vmem:[%s4397_s3 + $0xcc] ss:$16 sps:$4 sm:$0xff]   ;;  %v3042_v42 = vld [vmem:[%s4397_s3 + $0xc8] ss:$16 sps:$4 sm:$0xff]  }
 0x2da   : > { %v1824_v62 = vadd.f32 %v1726_v41, %v1568_v44  ;;  %v1841_v33 = vadd.f32 %v1777_v23, %v1585_v37  ;;  %v2059_v5 = vpack.c.bf16 %v2017_v63, %v2016_v38  ;;  %v3043_v25 = vld [vmem:[%s4397_s3 + $0xec] ss:$16 sps:$4 sm:$0xff]   ;;  %v3045_v16 = vld [vmem:[%s4397_s3 + $0xe8] ss:$16 sps:$4 sm:$0xff]  }
 0x2db   : > { %v1971_v56 = vld [vmem:[#allocation2 + $0x1e8] sm:$0xff]  ;;  %v1954_v60 = vld [vmem:[#allocation2 + $0x160] sm:$0xff] }
 0x2dc   : > { %1889 = vst.msk [vmem:[#allocation2 + $0x170] sm:$0xff] %vm258_vm2, %v1824_v62  ;;  %1906 = vst.msk [vmem:[#allocation2 + $0x1f8] sm:$0xff] %vm258_vm2, %v1841_v33  ;;  %2882 = vmatpush3.bf16.msra.mxu1 %v2059_v5  ;;  %v2035_v46 = vmul.f32 0.00390625, %v1971_v56  ;;  %v2018_v55 = vmul.f32 0.00390625, %v1954_v60 }
 0x2dd   : > { %v1729_v18 = vpop.xlane.xlu0 %1728 }
 0x2de   : > { %v1825_v54 = vadd.f32 %v1729_v18, %v1569_v35  ;;  %v2068_v21 = vpack.c.bf16 %v2035_v46, %v2034_v57 }
 0x2df   : > { %2359 = vmatmul.mubr.bf16.gmra.mrb[56].mxu1 %v3018_v19  ;;  %v1955_v17 = vld [vmem:[#allocation2 + $0x168] sm:$0xff]  ;;  %v1972_v12 = vld [vmem:[#allocation2 + $0x1f0] sm:$0xff] }
 0x2e0   : > { %1890 = vst.msk [vmem:[#allocation2 + $0x178] sm:$0xff] %vm258_vm2, %v1825_v54  ;;  %2883 = vmatprep.subr.bf16.mxu1 %v2068_v21  ;;  %v2019_v49 = vmul.f32 0.00390625, %v1955_v17  ;;  %2366 = vmatprep.mubr.bf16.mxu1 %v3019_v3  ;;  %v2036_v13 = vmul.f32 0.00390625, %v1972_v12 }
 0x2e2   : > { %v2060_v0 = vpack.c.bf16 %v2019_v49, %v2018_v55 }
 0x2e3   : > { %v1973_v8 = vld [vmem:[#allocation2 + $0x1f8] sm:$0xff]  ;;  %v1956_v47 = vld [vmem:[#allocation2 + $0x170] sm:$0xff] }
 0x2e4   : > { %2884 = vmatpush3.bf16.msra.mxu1 %v2060_v0  ;;  %v2037_v59 = vmul.f32 0.00390625, %v1973_v8  ;;  %v2020_v7 = vmul.f32 0.00390625, %v1956_v47 }
 0x2e6   : > { %v2069_v6 = vpack.c.bf16 %v2037_v59, %v2036_v13 }
 0x2e7   : > { %2367 = vmatmul.mubr.bf16.gmra.mrb[60].mxu1 %v3021_v58  ;;  %v1957_v2 = vld [vmem:[#allocation2 + $0x178] sm:$0xff] }
 0x2e8   : > { %2885 = vmatprep.subr.bf16.mxu1 %v2069_v6  ;;  %v2021_v10 = vmul.f32 0.00390625, %v1957_v2  ;;  %2407 = vmatprep.mubr.bf16.mxu1 %v3024_v36 }
 0x2ea   : > { %v2061_v4 = vpack.c.bf16 %v2021_v10, %v2020_v7 }
 0x2ec   : > { %2886 = vmatpush3.bf16.msra.mxu1 %v2061_v4  ;;  %v2102_v4 = vld [vmem:[%s4398_s4] sm:$0xff] }
 0x2ef   : > { %2408 = vmatmul.mubr.bf16.vlgmr.msra.gmra.mrb[64].mxu1 %v3022_v50 }
 0x2f0   : > { %2415 = vmatprep.mubr.bf16.mxu1 %v3025_v52  ;;  %v2103_v52 = vld [vmem:[%s4398_s4 + $0x8] sm:$0xff] }
 0x2f7   : > { %2416 = vmatmul.mubr.bf16.gmra.mrb[68].mxu1 %v3027_v39 }
 0x2f8   : > { %2423 = vmatprep.mubr.bf16.mxu1 %v3028_v20 }
 0x2ff   : > { %2424 = vmatmul.mubr.bf16.gmra.mrb[72].mxu1 %v3030_v22 }
 0x300   : > { %2431 = vmatprep.mubr.bf16.mxu1 %v3031_v30 }
 0x307   : > { %2432 = vmatmul.mubr.bf16.gmra.mrb[76].mxu1 %v3033_v28 }
 0x308   : > { %2439 = vmatprep.mubr.bf16.mxu1 %v3034_v40 }
 0x30f   : > { %2440 = vmatmul.mubr.bf16.gmra.mrb[80].mxu1 %v3036_v14 }
 0x310   : > { %2447 = vmatprep.mubr.bf16.mxu1 %v3037_v51 }
 0x317   : > { %2448 = vmatmul.mubr.bf16.gmra.mrb[84].mxu1 %v3039_v34 }
 0x318   : > { %2455 = vmatprep.mubr.bf16.mxu1 %v3040_v15  ;;  %v2104_v15 = vld [vmem:[%s4398_s4 + $0x10] sm:$0xff] }
 0x31f   : > { %2456 = vmatmul.mubr.bf16.gmra.mrb[88].mxu1 %v3042_v42 }
 0x320   : > { %2463 = vmatprep.mubr.bf16.mxu1 %v3043_v25  ;;  %v2105_v25 = vld [vmem:[%s4398_s4 + $0x18] sm:$0xff] }
 0x327   : > { %2464 = vmatmul.mubr.bf16.gmra.mrb[92].mxu1 %v3045_v16 }
 0x382   : > { %v2823_v45 = vpop.f32.mrb[32].mxu1 }
 0x383   : > { %v2824_v48 = vpop.f32.mrb[33].mxu1 }
 0x384   : > { %v2825_v53 = vadd.f32 %v2824_v48, %v2823_v45  ;;  %v2826_v29 = vpop.f32.mrb[34].mxu1 }
 0x385   : > { %v2827_v32 = vpop.f32.mrb[35].mxu1 }
 0x386   : > { %v2828_v31 = vadd.f32 %v2827_v32, %v2826_v29  ;;  %v2313_v20 = vadd.f32 %v2825_v53, %v2102_v4 }
 0x388   : > { %v2316_v40 = vadd.f32 %v2828_v31, %v2103_v52 }
 0x38a   : > { %v2829_v43 = vpop.f32.mrb[36].mxu1 }
 0x38b   : > { %v2830_v26 = vpop.f32.mrb[37].mxu1 }
 0x38c   : > { %v2831_v1 = vadd.f32 %v2830_v26, %v2829_v43  ;;  %v2832_v24 = vpop.f32.mrb[38].mxu1 }
 0x38d   : > { %v2833_v11 = vpop.f32.mrb[39].mxu1 }
 0x38e   : > { %v2834_v27 = vadd.f32 %v2833_v11, %v2832_v24  ;;  %v2321_v45 = vadd.f32 %v2831_v1, %v2104_v15  ;;  %v2106_v24 = vld [vmem:[%s4398_s4 + $0x20] sm:$0xff] }
 0x390   : > { %v2324_v32 = vadd.f32 %v2834_v27, %v2105_v25 }
 0x392   : > { %v2835_v44 = vpop.f32.mrb[40].mxu1 }
 0x393   : > { %v2836_v37 = vpop.f32.mrb[41].mxu1 }
 0x394   : > { %v2837_v9 = vadd.f32 %v2836_v37, %v2835_v44  ;;  %v2838_v38 = vpop.f32.mrb[42].mxu1  ;;  %v2107_v44 = vld [vmem:[%s4398_s4 + $0x28] sm:$0xff] }
 0x395   : > { %v2839_v63 = vpop.f32.mrb[43].mxu1 }
 0x396   : > { %v4130_v41 = vadd.f32 %v2839_v63, %v2838_v38  ;;  %v2329_v1 = vadd.f32 %v2837_v9, %v2106_v24  ;;  %v2108_v9 = vld [vmem:[%s4398_s4 + $0x30] sm:$0xff] }
 0x398   : > { %v2332_v27 = vadd.f32 %v4130_v41, %v2107_v44 }
 0x39a   : > { %v2841_v23 = vpop.f32.mrb[44].mxu1 }
 0x39b   : > { %v2842_v61 = vpop.f32.mrb[45].mxu1 }
 0x39c   : > { %v4132_v62 = vadd.f32 %v2842_v61, %v2841_v23  ;;  %v2844_v33 = vpop.f32.mrb[46].mxu1 }
 0x39d   : > { %v2845_v5 = vpop.f32.mrb[47].mxu1 }
 0x39e   : > { %v4134_v35 = vadd.f32 %v2845_v5, %v2844_v33 }
 0x3a2   : > { %v2847_v19 = vpop.f32.mrb[48].mxu1 }
 0x3a3   : > { %v2848_v56 = vpop.f32.mrb[49].mxu1 }
 0x3a4   : > { %v4136_v57 = vadd.f32 %v2848_v56, %v2847_v19  ;;  %v2850_v46 = vpop.f32.mrb[50].mxu1 }
 0x3a5   : > { %v2851_v3 = vpop.f32.mrb[51].mxu1 }
 0x3a6   : > { %v4138_v18 = vadd.f32 %v2851_v3, %v2850_v46 }
 0x3aa   : > { %v2853_v60 = vpop.f32.mrb[52].mxu1 }
 0x3ab   : > { %v2854_v54 = vpop.f32.mrb[53].mxu1 }
 0x3ac   : > { %v4140_v21 = vadd.f32 %v2854_v54, %v2853_v60  ;;  %v2856_v17 = vpop.f32.mrb[54].mxu1  ;;  %v2109_v54 = vld [vmem:[%s4398_s4 + $0x38] sm:$0xff] }
 0x3ad   : > { %v2857_v55 = vpop.f32.mrb[55].mxu1 }
 0x3ae   : > { %v4142_v49 = vadd.f32 %v2857_v55, %v2856_v17 }
 0x3b2   : > { %v2859_v12 = vpop.f32.mrb[56].mxu1 }
 0x3b3   : > { %v2860_v0 = vpop.f32.mrb[57].mxu1 }
 0x3b4   : > { %v4144_v58 = vadd.f32 %v2860_v0, %v2859_v12  ;;  %v2862_v8 = vpop.f32.mrb[58].mxu1  ;;  %v2337_v12 = vadd.f32 %v4132_v62, %v2108_v9  ;;  %v2110_v62 = vld [vmem:[%s4398_s4 + $0x40] sm:$0xff] }
 0x3b5   : > { %v2863_v13 = vpop.f32.mrb[59].mxu1 }
 0x3b6   : > { %v4146_v59 = vadd.f32 %v2863_v13, %v2862_v8 }
 0x3ba   : > { %v2865_v36 = vpop.f32.mrb[60].mxu1 }
 0x3bb   : > { %v2866_v47 = vpop.f32.mrb[61].mxu1 }
 0x3bc   : > { %v4148_v6 = vadd.f32 %v2866_v47, %v2865_v36  ;;  %v2868_v2 = vpop.f32.mrb[62].mxu1  ;;  %v2340_v36 = vadd.f32 %v4134_v35, %v2109_v54 }
 0x3bd   : > { %v2869_v7 = vpop.f32.mrb[63].mxu1 }
 0x3be   : > { %v4150_v10 = vadd.f32 %v2869_v7, %v2868_v2 }
 0x3c2   : > { %v2887_v50 = vpop.f32.mrb[64].mxu1 }
 0x3c3   : > { %v2888_v39 = vpop.f32.mrb[65].mxu1 }
 0x3c4   : > { %v2889_v22 = vadd.f32 %v2888_v39, %v2887_v50  ;;  %v2890_v30 = vpop.f32.mrb[66].mxu1 }
 0x3c5   : > { %v2891_v28 = vpop.f32.mrb[67].mxu1 }
 0x3c6   : > { %v4158_v14 = vadd.f32 %v2889_v22, %v2313_v20  ;;  %v2892_v51 = vadd.f32 %v2891_v28, %v2890_v30  ;;  %v2111_v22 = vld [vmem:[%s4398_s4 + $0x48] sm:$0xff] }
 0x3c7   : > { %v2348_v25 = vadd.f32 %v4138_v18, %v2111_v22  ;;  %v2113_v18 = vld [vmem:[%s4398_s4 + $0x58] sm:$0xff] }
 0x3c8   : > { %v4160_v34 = vadd.f32 %v2892_v51, %v2316_v40  ;;  %v2472_v5 = vsel %vm258_vm2, %v4158_v14, -inf  ;;  %v2345_v40 = vadd.f32 %v4136_v57, %v2110_v62 }
 0x3ca   : > { %v2893_v42 = vpop.f32.mrb[68].mxu1  ;;  %v2473_v3 = vsel %vm258_vm2, %v4160_v34, -inf }
 0x3cb   : > { %v2894_v16 = vpop.f32.mrb[69].mxu1 }
 0x3cc   : > { %v2895_v48 = vadd.f32 %v2894_v16, %v2893_v42  ;;  %v2896_v53 = vpop.f32.mrb[70].mxu1 }
 0x3cd   : > { %v2897_v29 = vpop.f32.mrb[71].mxu1 }
 0x3ce   : > { %v4168_v31 = vadd.f32 %v2895_v48, %v2321_v45  ;;  %v2898_v43 = vadd.f32 %v2897_v29, %v2896_v53  ;;  %v2112_v29 = vld [vmem:[%s4398_s4 + $0x50] sm:$0xff] }
 0x3cf   : > { %v2353_v44 = vadd.f32 %v4140_v21, %v2112_v29  ;;  %v2115_v21 = vld [vmem:[%s4398_s4 + $0x68] sm:$0xff] }
 0x3d0   : > { %v4170_v26 = vadd.f32 %v2898_v43, %v2324_v32  ;;  %v2474_v7 = vsel %vm258_vm2, %v4168_v31, -inf }
 0x3d2   : > { %v2899_v11 = vpop.f32.mrb[72].mxu1  ;;  %v2475_v39 = vsel %vm258_vm2, %v4170_v26, -inf }
 0x3d3   : > { %v2900_v37 = vpop.f32.mrb[73].mxu1 }
 0x3d4   : > { %v2901_v38 = vadd.f32 %v2900_v37, %v2899_v11  ;;  %v2902_v63 = vpop.f32.mrb[74].mxu1 }
 0x3d5   : > { %v2903_v23 = vpop.f32.mrb[75].mxu1 }
 0x3d6   : > { %v4179_v61 = vadd.f32 %v2901_v38, %v2329_v1  ;;  %v2904_v33 = vadd.f32 %v2903_v23, %v2902_v63  ;;  %v2356_v63 = vadd.f32 %v4142_v49, %v2113_v18 }
 0x3d8   : > { %v2476_v19 = vsel %vm258_vm2, %v4179_v61, -inf  ;;  %v4185_v56 = vadd.f32 %v2904_v33, %v2332_v27 }
 0x3d9   : > { %v2477_v46 = vmax.f32 %v2472_v5, %v2476_v19  ;;  %v2114_v19 = vld [vmem:[%s4398_s4 + $0x60] sm:$0xff] }
 0x3da   : > { %v2478_v41 = vsel %vm258_vm2, %v4185_v56, -inf  ;;  %v2905_v60 = vpop.f32.mrb[76].mxu1  ;;  %v2361_v49 = vadd.f32 %v4144_v58, %v2114_v19  ;;  %v2117_v58 = vld [vmem:[%s4398_s4 + $0x78] sm:$0xff] }
 0x3db   : > { %v2479_v17 = vmax.f32 %v2473_v3, %v2478_v41  ;;  %v2906_v55 = vpop.f32.mrb[77].mxu1 }
 0x3dc   : > { %v2907_v0 = vadd.f32 %v2906_v55, %v2905_v60  ;;  %v2908_v8 = vpop.f32.mrb[78].mxu1 }
 0x3dd   : > { %v2909_v13 = vpop.f32.mrb[79].mxu1 }
 0x3de   : > { %v4199_v47 = vadd.f32 %v2907_v0, %v2337_v12  ;;  %v2910_v2 = vadd.f32 %v2909_v13, %v2908_v8  ;;  %v2364_v12 = vadd.f32 %v4146_v59, %v2115_v21 }
 0x3e0   : > { %v2480_v4 = vsel %vm258_vm2, %v4199_v47, -inf  ;;  %v4205_v50 = vadd.f32 %v2910_v2, %v2340_v36  ;;  %v2116_v2 = vld [vmem:[%s4398_s4 + $0x70] sm:$0xff] }
 0x3e1   : > { %v2481_v52 = vmax.f32 %v2474_v7, %v2480_v4  ;;  %v2369_v59 = vadd.f32 %v4148_v6, %v2116_v2 }
 0x3e2   : > { %v2482_v35 = vsel %vm258_vm2, %v4205_v50, -inf  ;;  %v2911_v20 = vpop.f32.mrb[80].mxu1 }
 0x3e3   : > { %v2483_v30 = vmax.f32 %v2475_v39, %v2482_v35  ;;  %v2912_v28 = vpop.f32.mrb[81].mxu1 }
 0x3e4   : > { %v2913_v51 = vadd.f32 %v2912_v28, %v2911_v20  ;;  %v2914_v15 = vpop.f32.mrb[82].mxu1  ;;  %v2372_v28 = vadd.f32 %v4150_v10, %v2117_v58 }
 0x3e5   : > { %v2915_v42 = vpop.f32.mrb[83].mxu1 }
 0x3e6   : > { %v4219_v16 = vadd.f32 %v2913_v51, %v2345_v40  ;;  %v2916_v45 = vadd.f32 %v2915_v42, %v2914_v15 }
 0x3e8   : > { %v2484_v48 = vsel %vm258_vm2, %v4219_v16, -inf  ;;  %v4223_v53 = vadd.f32 %v2916_v45, %v2348_v25 }
 0x3e9   : > { %v2485_v32 = vmax.f32 %v2477_v46, %v2484_v48 }
 0x3ea   : > { %v2486_v57 = vsel %vm258_vm2, %v4223_v53, -inf  ;;  %v2917_v43 = vpop.f32.mrb[84].mxu1 }
 0x3eb   : > { %v2487_v24 = vmax.f32 %v2479_v17, %v2486_v57  ;;  %v2918_v11 = vpop.f32.mrb[85].mxu1 }
 0x3ec   : > { %v2919_v37 = vadd.f32 %v2918_v11, %v2917_v43  ;;  %v2920_v1 = vpop.f32.mrb[86].mxu1 }
 0x3ed   : > { %v2921_v38 = vpop.f32.mrb[87].mxu1 }
 0x3ee   : > { %v2450_v23 = vadd.f32 %v2919_v37, %v2353_v44  ;;  %v2922_v27 = vadd.f32 %v2921_v38, %v2920_v1 }
 0x3f0   : > { %v2488_v33 = vsel %vm258_vm2, %v2450_v23, -inf  ;;  %v2453_v5 = vadd.f32 %v2922_v27, %v2356_v63 }
 0x3f1   : > { %v2489_v9 = vmax.f32 %v2481_v52, %v2488_v33 }
 0x3f2   : > { %v2490_v46 = vsel %vm258_vm2, %v2453_v5, -inf  ;;  %v2923_v3 = vpop.f32.mrb[88].mxu1 }
 0x3f3   : > { %v2491_v41 = vmax.f32 %v2483_v30, %v2490_v46  ;;  %v2924_v60 = vpop.f32.mrb[89].mxu1 }
 0x3f4   : > { %v2925_v54 = vadd.f32 %v2924_v60, %v2923_v3  ;;  %v2926_v17 = vpop.f32.mrb[90].mxu1 }
 0x3f5   : > { %v2927_v55 = vpop.f32.mrb[91].mxu1 }
 0x3f6   : > { %v2458_v0 = vadd.f32 %v2925_v54, %v2361_v49  ;;  %v2928_v8 = vadd.f32 %v2927_v55, %v2926_v17 }
 0x3f8   : > { %v2492_v13 = vsel %vm258_vm2, %v2458_v0, -inf  ;;  %v2461_v36 = vadd.f32 %v2928_v8, %v2364_v12 }
 0x3f9   : > { %v2493_v7 = vmax.f32 %v2485_v32, %v2492_v13 }
 0x3fa   : > { %v2494_v4 = vsel %vm258_vm2, %v2461_v36, -inf  ;;  %v2929_v62 = vpop.f32.mrb[92].mxu1 }
 0x3fb   : > { %v2495_v52 = vmax.f32 %v2487_v24, %v2494_v4  ;;  %v2930_v39 = vpop.f32.mrb[93].mxu1 }
 0x3fc   : > { %v2931_v35 = vadd.f32 %v2930_v39, %v2929_v62  ;;  %v2932_v20 = vpop.f32.mrb[94].mxu1 }
 0x3fd   : > { %v2500_v22 = vmax.f32 %v2493_v7, %v2495_v52  ;;  %v2933_v30 = vpop.f32.mrb[95].mxu1 }
 0x3fe   : > { %v2466_v40 = vadd.f32 %v2931_v35, %v2369_v59  ;;  %v2934_v51 = vadd.f32 %v2933_v30, %v2932_v20 }
 0x400   : > { %v2496_v15 = vsel %vm258_vm2, %v2466_v40, -inf  ;;  %v2469_v42 = vadd.f32 %v2934_v51, %v2372_v28 }
 0x401   : > { %v2497_v25 = vmax.f32 %v2489_v9, %v2496_v15 }
 0x402   : > { %v2498_v45 = vsel %vm258_vm2, %v2469_v42, -inf }
 0x403   : > { %v2499_v48 = vmax.f32 %v2491_v41, %v2498_v45 }
 0x405   : > { %v2501_v29 = vmax.f32 %v2497_v25, %v2499_v48 }
 0x407   : > { %v2502_v32 = vmax.f32 %v2500_v22, %v2501_v29 }
 0x409   : > { %v2503_v57 = vrot.slane %v2502_v32, 4 }
 0x40b   : > { %v2504_v43 = vmax.f32 %v2502_v32, %v2503_v57 }
 0x40d   : > { %v2505_v6 = vrot.slane %v2504_v43, 2 }
 0x40f   : > { %v2506_v18 = vmax.f32 %v2504_v43, %v2505_v6 }
 0x411   : > { %v2507_v24 = vrot.slane %v2506_v18, 1 }
 0x413   : > { %v2508_v11 = vmax.f32 %v2506_v18, %v2507_v24 }
 0x415   : > { %v4258_v44 = vsub.f32 %v4158_v14, %v2508_v11  ;;  %v4261_v10 = vsub.f32 %v4160_v34, %v2508_v11  ;;  %v4264_v37 = vsub.f32 %v4168_v31, %v2508_v11  ;;  %v4267_v1 = vsub.f32 %v4170_v26, %v2508_v11 }
 0x416   : > { %v4270_v38 = vsub.f32 %v4179_v61, %v2508_v11  ;;  %v4273_v63 = vsub.f32 %v4185_v56, %v2508_v11  ;;  %v4276_v27 = vsub.f32 %v4199_v47, %v2508_v11  ;;  %v4279_v14 = vsub.f32 %v4205_v50, %v2508_v11 }
 0x417   : > { %v4282_v34 = vsub.f32 %v4219_v16, %v2508_v11  ;;  %v4285_v31 = vsub.f32 %v4223_v53, %v2508_v11  ;;  %v4287_v26 = vsub.f32 %v2450_v23, %v2508_v11  ;;  %v4289_v33 = vsub.f32 %v2453_v5, %v2508_v11 }
 0x418   : > { %v4291_v61 = vsub.f32 %v2458_v0, %v2508_v11  ;;  %v4293_v56 = vsub.f32 %v2461_v36, %v2508_v11  ;;  %v4295_v19 = vsub.f32 %v2466_v40, %v2508_v11  ;;  %v4297_v47 = vsub.f32 %v2469_v42, %v2508_v11 }
 0x419   : > { %v2525_v50 = vmul.f32 1.442695, %v4258_v44  ;;  %v2527_v16 = vmul.f32 1.442695, %v4261_v10  ;;  %v2529_v9 = vmul.f32 1.442695, %v4264_v37 }
 0x41a   : > { %v2531_v53 = vmul.f32 1.442695, %v4267_v1  ;;  %v2533_v23 = vmul.f32 1.442695, %v4270_v38  ;;  %v2535_v5 = vmul.f32 1.442695, %v4273_v63 }
 0x41b   : > { %3046 = vpow2.f32 %v2525_v50  ;;  %v2537_v46 = vmul.f32 1.442695, %v4276_v27  ;;  %v2539_v3 = vmul.f32 1.442695, %v4279_v14  ;;  %v2541_v21 = vmul.f32 1.442695, %v4282_v34 }
 0x41c   : > { %3048 = vpow2.f32 %v2527_v16  ;;  %v2543_v49 = vmul.f32 1.442695, %v4285_v31  ;;  %v2545_v0 = vmul.f32 1.442695, %v4287_v26  ;;  %v2547_v2 = vmul.f32 1.442695, %v4289_v33 }
 0x41d   : > { %3050 = vpow2.f32 %v2529_v9  ;;  %v2549_v58 = vmul.f32 1.442695, %v4291_v61  ;;  %v2551_v35 = vmul.f32 1.442695, %v4293_v56  ;;  %v2553_v28 = vmul.f32 1.442695, %v4295_v19 }
 0x41e   : > { %3052 = vpow2.f32 %v2531_v53  ;;  %v2555_v42 = vmul.f32 1.442695, %v4297_v47 }
 0x41f   : > { %3054 = vpow2.f32 %v2533_v23 }
 0x420   : > { %3056 = vpow2.f32 %v2535_v5 }
 0x421   : > { %3058 = vpow2.f32 %v2537_v46 }
 0x422   : > { %3060 = vpow2.f32 %v2539_v3 }
 0x423   : > { %3062 = vpow2.f32 %v2541_v21 }
 0x424   : > { %3064 = vpow2.f32 %v2543_v49 }
 0x425   : > { %v3047_v41 = vpop.eup %3046  ;;  %3066 = vpow2.f32 %v2545_v0 }
 0x426   : > { %v3049_v60 = vpop.eup %3048  ;;  %v2557_v54 = vsel %vm258_vm2, %v3047_v41, 0.0  ;;  %3068 = vpow2.f32 %v2547_v2 }
 0x427   : > { %v3051_v17 = vpop.eup %3050  ;;  %v2558_v55 = vsel %vm258_vm2, %v3049_v60, 0.0  ;;  %3070 = vpow2.f32 %v2549_v58 }
 0x428   : > { %v3053_v12 = vpop.eup %3052  ;;  %v2559_v8 = vadd.f32 %v2558_v55, %v2557_v54  ;;  %v2560_v13 = vsel %vm258_vm2, %v3051_v17, 0.0  ;;  %3072 = vpow2.f32 %v2551_v35 }
 0x429   : > { %v3055_v36 = vpop.eup %3054  ;;  %v2562_v4 = vsel %vm258_vm2, %v3053_v12, 0.0  ;;  %3074 = vpow2.f32 %v2553_v28 }
 0x42a   : > { %v2561_v7 = vadd.f32 %v2560_v13, %v2559_v8  ;;  %v3057_v62 = vpop.eup %3056  ;;  %v2564_v39 = vsel %vm258_vm2, %v3055_v36, 0.0  ;;  %3076 = vpow2.f32 %v2555_v42 }
 0x42b   : > { %v3059_v59 = vpop.eup %3058  ;;  %v2566_v22 = vsel %vm258_vm2, %v3057_v62, 0.0 }
 0x42c   : > { %v2563_v52 = vadd.f32 %v2562_v4, %v2561_v7  ;;  %v3061_v30 = vpop.eup %3060  ;;  %v2568_v51 = vsel %vm258_vm2, %v3059_v59, 0.0 }
 0x42d   : > { %v3063_v15 = vpop.eup %3062  ;;  %v2570_v45 = vsel %vm258_vm2, %v3061_v30, 0.0 }
 0x42e   : > { %v2565_v20 = vadd.f32 %v2564_v39, %v2563_v52  ;;  %v3065_v48 = vpop.eup %3064  ;;  %v2572_v32 = vsel %vm258_vm2, %v3063_v15, 0.0 }
 0x42f   : > { %v3067_v57 = vpop.eup %3066  ;;  %v2574_v6 = vsel %vm258_vm2, %v3065_v48, 0.0 }
 0x430   : > { %v2567_v40 = vadd.f32 %v2566_v22, %v2565_v20  ;;  %v3069_v18 = vpop.eup %3068  ;;  %v2576_v11 = vsel %vm258_vm2, %v3067_v57, 0.0 }
 0x431   : > { %v3071_v50 = vpop.eup %3070  ;;  %v2578_v9 = vsel %vm258_vm2, %v3069_v18, 0.0 }
 0x432   : > { %v2569_v25 = vadd.f32 %v2568_v51, %v2567_v40  ;;  %v3073_v53 = vpop.eup %3072  ;;  %v2580_v5 = vsel %vm258_vm2, %v3071_v50, 0.0 }
 0x433   : > { %v3075_v46 = vpop.eup %3074  ;;  %v2582_v21 = vsel %vm258_vm2, %v3073_v53, 0.0 }
 0x434   : > { %v2571_v29 = vadd.f32 %v2570_v45, %v2569_v25  ;;  %v3077_v41 = vpop.eup %3076  ;;  %v2584_v49 = vsel %vm258_vm2, %v3075_v46, 0.0 }
 0x435   : > { %v2586_v17 = vsel %vm258_vm2, %v3077_v41, 0.0 }
 0x436   : > { %v2573_v43 = vadd.f32 %v2572_v32, %v2571_v29 }
 0x438   : > { %v2575_v24 = vadd.f32 %v2574_v6, %v2573_v43 }
 0x43a   : > { %v2577_v16 = vadd.f32 %v2576_v11, %v2575_v24 }
 0x43c   : > { %v2579_v23 = vadd.f32 %v2578_v9, %v2577_v16 }
 0x43e   : > { %v2581_v3 = vadd.f32 %v2580_v5, %v2579_v23 }
 0x440   : > { %v2583_v60 = vadd.f32 %v2582_v21, %v2581_v3 }
 0x442   : > { %v2585_v54 = vadd.f32 %v2584_v49, %v2583_v60 }
 0x444   : > { %v2587_v55 = vadd.f32 %v2586_v17, %v2585_v54 }
 0x446   : > { %v2588_v12 = vrot.slane %v2587_v55, 4 }
 0x448   : > { %v2589_v0 = vadd.f32 %v2588_v12, %v2587_v55 }
 0x44a   : > { %v2590_v8 = vrot.slane %v2589_v0, 2 }
 0x44c   : > { %v2591_v13 = vadd.f32 %v2590_v8, %v2589_v0 }
 0x44e   : > { %v2592_v36 = vrot.slane %v2591_v13, 1 }
 0x450   : > { %v2593_v2 = vadd.f32 %v2592_v36, %v2591_v13 }
 0x452   : > { %3078 = vlog2.f32 %v2593_v2 }
 0x45c   : > { %v3079_v7 = vpop.eup %3078 }
 0x45d   : > { %v2595_v4 = vmul.f32 0.6931472, %v3079_v7 }
 0x45f   : > { %v2596_v62 = vsub.f32 %v4258_v44, %v2595_v4  ;;  %v2597_v58 = vsub.f32 %v4261_v10, %v2595_v4  ;;  %v2598_v52 = vsub.f32 %v4264_v37, %v2595_v4  ;;  %v2599_v39 = vsub.f32 %v4267_v1, %v2595_v4 }
 0x460   : > { %v2600_v59 = vsub.f32 %v4270_v38, %v2595_v4  ;;  %v2601_v35 = vsub.f32 %v4273_v63, %v2595_v4  ;;  %v2602_v20 = vsub.f32 %v4276_v27, %v2595_v4  ;;  %v2603_v22 = vsub.f32 %v4279_v14, %v2595_v4 }
 0x461   : > { %v2604_v44 = vsub.f32 %v4282_v34, %v2595_v4  ;;  %v2605_v10 = vsub.f32 %v4285_v31, %v2595_v4  ;;  %v2606_v37 = vsub.f32 %v4287_v26, %v2595_v4  ;;  %v2607_v1 = vsub.f32 %v4289_v33, %v2595_v4  ;;  %2612 = vst.msk [vmem:[%s4335_s23] sm:$0xff] %vm258_vm2, %v2596_v62 }
 0x462   : > { %2613 = vst.msk [vmem:[%s4335_s23 + $0x8] sm:$0xff] %vm258_vm2, %v2597_v58  ;;  %2614 = vst.msk [vmem:[%s4335_s23 + $0x10] sm:$0xff] %vm258_vm2, %v2598_v52  ;;  %v2608_v38 = vsub.f32 %v4291_v61, %v2595_v4  ;;  %v2609_v63 = vsub.f32 %v4293_v56, %v2595_v4  ;;  %v2610_v27 = vsub.f32 %v4295_v19, %v2595_v4 }
 0x463   : > { %2615 = vst.msk [vmem:[%s4335_s23 + $0x18] sm:$0xff] %vm258_vm2, %v2599_v39  ;;  %v2611_v14 = vsub.f32 %v4297_v47, %v2595_v4  ;;  %2616 = vst.msk [vmem:[%s4335_s23 + $0x20] sm:$0xff] %vm258_vm2, %v2600_v59 }
 0x464   : > { %2617 = vst.msk [vmem:[%s4335_s23 + $0x28] sm:$0xff] %vm258_vm2, %v2601_v35  ;;  %2618 = vst.msk [vmem:[%s4335_s23 + $0x30] sm:$0xff] %vm258_vm2, %v2602_v20 }
 0x465   : > { %2619 = vst.msk [vmem:[%s4335_s23 + $0x38] sm:$0xff] %vm258_vm2, %v2603_v22  ;;  %2620 = vst.msk [vmem:[%s4335_s23 + $0x40] sm:$0xff] %vm258_vm2, %v2604_v44 }
 0x466   : > { %2621 = vst.msk [vmem:[%s4335_s23 + $0x48] sm:$0xff] %vm258_vm2, %v2605_v10  ;;  %2622 = vst.msk [vmem:[%s4335_s23 + $0x50] sm:$0xff] %vm258_vm2, %v2606_v37 }
 0x467   : > { %2623 = vst.msk [vmem:[%s4335_s23 + $0x58] sm:$0xff] %vm258_vm2, %v2607_v1  ;;  %2624 = vst.msk [vmem:[%s4335_s23 + $0x60] sm:$0xff] %vm258_vm2, %v2608_v38 }
 0x468   : > { %2625 = vst.msk [vmem:[%s4335_s23 + $0x68] sm:$0xff] %vm258_vm2, %v2609_v63  ;;  %2626 = vst.msk [vmem:[%s4335_s23 + $0x70] sm:$0xff] %vm258_vm2, %v2610_v27 }
 0x469   : > { %2627 = vst.msk [vmem:[%s4335_s23 + $0x78] sm:$0xff] %vm258_vm2, %v2611_v14 }
 0x46a PF: > { %s15_s20 = sadd.s32 1, %s3102_s20   ;;  %s4474_s18 = smov %s3098_s19 }
 0x46b   : > { %p12_p5 = scmp.ge.s32.totalorder %s15_s20, 4   ;;  %s4475_s19 = smov %s4477_s21 }
 0x46d   :  { %14 = sbr.rel (!%p12_p5) target bundleno = 2 (0x2), region = 78 }

</bundles_post_ra>
